<compile_context>
chip_gen: v7x
topology: tpu7x:2x2x1
jax: 0.10.0
libtpu: 0.0.40
codegen_flags: <defaults>
</compile_context>

<pallas_src>
import functools

import jax
import jax.numpy as jnp
from jax import lax
from jax.experimental import pallas as pl
from jax.experimental.pallas import tpu as pltpu

_EPS = 1e-12                               # F.normalize eps
_MXU_PREC = jax.lax.Precision.HIGHEST      # full-precision f32 MXU passes (one-hot gathers)


def _capsule_indicators(k, d, dd):
    """cap_nd[j, c] = 1 if feature column j belongs to capsule c; cap_kd is its transpose.
    Built from iota + compares (no int division, no in-kernel transpose)."""
    j_nd = lax.broadcasted_iota(jnp.int32, (d, k), 0)
    c_nd = lax.broadcasted_iota(jnp.int32, (d, k), 1)
    cap_nd = ((j_nd >= c_nd * dd) & (j_nd < (c_nd + 1) * dd)).astype(jnp.float32)  # (d, k)
    c_kd = lax.broadcasted_iota(jnp.int32, (k, d), 0)
    j_kd = lax.broadcasted_iota(jnp.int32, (k, d), 1)
    cap_kd = ((j_kd >= c_kd * dd) & (j_kd < (c_kd + 1) * dd)).astype(jnp.float32)  # (k, d)
    return cap_nd, cap_kd


def _caps_normalize(v, cap_nd, cap_kd):
    """Per-capsule L2 normalization of the rows of v (rows, d).
    Matches F.normalize(v.view(-1, k, dd), dim=2)."""
    ss = jnp.dot(v * v, cap_nd, preferred_element_type=jnp.float32,
                 precision=_MXU_PREC)                       # (rows, k) sum of squares
    inv = 1.0 / jnp.maximum(jnp.sqrt(ss), _EPS)             # (rows, k)
    inv_full = jnp.dot(inv, cap_kd, preferred_element_type=jnp.float32,
                       precision=_MXU_PREC)                 # (rows, d) broadcast back
    return v * inv_full


def _disen_conv_kernel(src_ref, trg_ref, x_ref, u_ref, xn_ref, agg_ref, *, k, tau):
    it = pl.program_id(0)                  # routing iteration (outer, sequential)
    et = pl.program_id(1)                  # edge tile          (inner, sequential)
    n, d = x_ref.shape
    tm_e = src_ref.shape[0]
    dd = d // k

    cap_nd, cap_kd = _capsule_indicators(k, d, dd)

    # ---- one-time prologue: normalize x per capsule, u_0 = x_norm ----------------
    @pl.when((it == 0) & (et == 0))
    def _():
        xn = _caps_normalize(x_ref[...], cap_nd, cap_kd)
        xn_ref[...] = xn
        u_ref[...] = xn

    # ---- per-iteration init of the scatter-add accumulator -----------------------
    @pl.when(et == 0)
    def _():
        agg_ref[...] = jnp.zeros_like(agg_ref)

    # ---- per-edge-tile routing step ----------------------------------------------
    # One-hot rows for this edge tile. Padded edges carry node id == n, which matches
    # no column -> all-zero rows -> no contribution and no NaNs.
    node_ids = lax.broadcasted_iota(jnp.int32, (tm_e, n), 1)
    s_onehot = (src_ref[...] == node_ids).astype(jnp.float32)      # (tm_e, n)
    t_onehot = (trg_ref[...] == node_ids).astype(jnp.float32)      # (tm_e, n)

    z = jnp.dot(s_onehot, xn_ref[...], preferred_element_type=jnp.float32,
                precision=_MXU_PREC)                               # gather x_norm[src]
    u_t = jnp.dot(t_onehot, u_ref[...], preferred_element_type=jnp.float32,
                  precision=_MXU_PREC)                             # gather u[trg]

    # Per-edge, per-capsule dot products -> softmax over capsules.
    p = jnp.dot(z * u_t, cap_nd, preferred_element_type=jnp.float32,
                precision=_MXU_PREC)                               # (tm_e, k)
    p = p * (1.0 / tau)
    p = p - jnp.max(p, axis=1, keepdims=True)
    p = jnp.exp(p)
    p = p / jnp.sum(p, axis=1, keepdims=True)

    # Weight messages and scatter-add by target node:
    #   agg += t_onehot^T @ (z * broadcast(p))   (transposed-LHS MXU matmul == scatter_add_)
    p_full = jnp.dot(p, cap_kd, preferred_element_type=jnp.float32,
                     precision=_MXU_PREC)                          # (tm_e, d)
    msg = z * p_full
    agg_ref[...] += lax.dot_general(
        t_onehot, msg, (((0,), (0,)), ((), ())),
        preferred_element_type=jnp.float32, precision=_MXU_PREC)   # (n, d)

    # ---- epilogue of every routing iteration: u = normalize(agg + x_norm) --------
    @pl.when(et == pl.num_programs(1) - 1)
    def _():
        u_ref[...] = _caps_normalize(agg_ref[...] + xn_ref[...], cap_nd, cap_kd)


def _round_up(a, b):
    return ((a + b - 1) // b) * b


def disen_conv(x, edge_index, *, k, niter, tau=1.0, edge_tile=512):
    """Pallas TPU implementation of DisenConv(k, niter, tau).forward(x, edge_index)."""
    n, d = x.shape
    assert d % k == 0, "feature dim must be divisible by the number of latent factors"
    assert niter >= 1
    m = edge_index.shape[1]

    # Edge-tile size: multiple of 8 sublanes, capped by the (padded) edge count.
    tm_e = min(_round_up(edge_tile, 8), _round_up(m, 8))
    m_pad = _round_up(m, tm_e)

    src = edge_index[0].astype(jnp.int32)
    trg = edge_index[1].astype(jnp.int32)
    if m_pad != m:
        # Pad with an out-of-range node id -> all-zero one-hot rows, no contribution.
        pad = jnp.full((m_pad - m,), n, dtype=jnp.int32)
        src = jnp.concatenate([src, pad])
        trg = jnp.concatenate([trg, pad])
    src2d = src.reshape(m_pad, 1)
    trg2d = trg.reshape(m_pad, 1)
    n_edge_tiles = m_pad // tm_e

    kernel = functools.partial(_disen_conv_kernel, k=k, tau=float(tau))

    # TODO(synk): x / u / accumulator are kept fully VMEM-resident and the gather/scatter
    # is a dense one-hot matmul (O(m*n*d)); large graphs need a DMA-gather +
    # sorted-segment scatter kernel instead.
    return pl.pallas_call(
        kernel,
        out_shape=jax.ShapeDtypeStruct((n, d), jnp.float32),
        grid=(niter, n_edge_tiles),
        in_specs=[
            pl.BlockSpec((tm_e, 1), lambda it, et: (et, 0)),    # src tile (streamed)
            pl.BlockSpec((tm_e, 1), lambda it, et: (et, 0)),    # trg tile (streamed)
            pl.BlockSpec((n, d), lambda it, et: (0, 0)),        # x (VMEM-resident)
        ],
        out_specs=pl.BlockSpec((n, d), lambda it, et: (0, 0)),  # u (VMEM-resident, lane-dense)
        scratch_shapes=[
            pltpu.VMEM((n, d), jnp.float32),    # x_norm
            pltpu.VMEM((n, d), jnp.float32),    # scatter-add accumulator
        ],
        compiler_params=pltpu.CompilerParams(
            dimension_semantics=("arbitrary", "arbitrary"),
            vmem_limit_bytes=32 * 1024 * 1024,
        ),
    )(src2d, trg2d, x.astype(jnp.float32))


def disen_conv_reference(x, edge_index, *, k, niter, tau=1.0):
    """Plain-JAX port of the PyTorch DisenConv.forward, used as the correctness oracle."""
    src, trg = edge_index[0], edge_index[1]
    n, d = x.shape
    dd = d // k

    def caps_normalize(v):
        v3 = v.reshape(n, k, dd)
        nrm = jnp.sqrt(jnp.sum(v3 * v3, axis=2, keepdims=True))
        v3 = v3 / jnp.maximum(nrm, 1e-12)
        return v3.reshape(n, d)

    x = caps_normalize(x)
    m = src.shape[0]
    z = x[src].reshape(m, k, dd)
    u = x
    for _ in range(niter):
        p = jnp.sum(z * u[trg].reshape(m, k, dd), axis=2)
        p = jax.nn.softmax(p / tau, axis=1)
        scatter_src = (z * p[:, :, None]).reshape(m, d)
        u = jnp.zeros((n, d), x.dtype).at[trg].add(scatter_src)
        u = u + x
        u = caps_normalize(u)
    return u


if __name__ == "__main__":
    key = jax.random.PRNGKey(0)
    kx, ks, kt = jax.random.split(key, 3)

    N_NODES, K_FACTORS, DELTA_D = 16, 4, 32     # d = 128 -> lane-dense output tiles
    D = K_FACTORS * DELTA_D
    M_EDGES = 42                                # not a multiple of the edge tile -> exercises padding
    NITER, TAU = 3, 1.0

    x = jax.random.normal(kx, (N_NODES, D), dtype=jnp.float32)
    src = jax.random.randint(ks, (M_EDGES,), 0, N_NODES, dtype=jnp.int32)
    trg = jax.random.randint(kt, (M_EDGES,), 0, N_NODES, dtype=jnp.int32)
    edge_index = jnp.stack([src, trg])

    u = disen_conv(x, edge_index, k=K_FACTORS, niter=NITER, tau=TAU, edge_tile=16)
    u = jax.block_until_ready(u)

    u_ref = disen_conv_reference(x, edge_index, k=K_FACTORS, niter=NITER, tau=TAU)
    assert u.shape == (N_NODES, D)
    assert bool(jnp.all(jnp.isfinite(u)))
    # Tolerance leaves margin for MXU rounding of the f32 matmul passes.
    assert jnp.allclose(u, u_ref, atol=1e-3, rtol=1e-3), float(jnp.max(jnp.abs(u - u_ref)))

    print("KERNEL_OK")
</pallas_src>

<mosaic_0001>
module attributes {stable_mosaic.version = 11 : i64} {
  func.func @_disen_conv_kernel(%arg0: i32, %arg1: i32, %arg2: memref<16x1xi32, #tpu.memory_space<vmem>>, %arg3: memref<16x1xi32, #tpu.memory_space<vmem>>, %arg4: memref<16x128xf32, #tpu.memory_space<vmem>>, %arg5: memref<16x128xf32, #tpu.memory_space<vmem>>, %arg6: memref<16x128xf32, #tpu.memory_space<vmem>>, %arg7: memref<16x128xf32, #tpu.memory_space<vmem>>) attributes {dimension_semantics = [#tpu.dimension_semantics<arbitrary>, #tpu.dimension_semantics<arbitrary>], iteration_bounds = array<i64: 3, 3>, scalar_prefetch = 0 : i64, scratch_operands = 2 : i64, tpu.core_type = #tpu.core_type<tc>, window_params = [{transform_indices = @transform_0, window_bounds = array<i64: 16, 1>}, {transform_indices = @transform_1, window_bounds = array<i64: 16, 1>}, {pipeline_mode = #tpu.pipeline_mode<synchronous>, transform_indices = @transform_2, window_bounds = array<i64: 16, 128>}, {pipeline_mode = #tpu.pipeline_mode<synchronous>, transform_indices = @transform_3, window_bounds = array<i64: 16, 128>}]} {
    %0 = tpu.iota {dimensions = array<i32: 0>} : vector<128x4xi32>
    %1 = tpu.iota {dimensions = array<i32: 1>} : vector<128x4xi32>
    %c32_i32 = arith.constant 32 : i32
    %2 = vector.broadcast %c32_i32 : i32 to vector<128x4xi32>
    %3 = arith.muli %1, %2 : vector<128x4xi32>
    %4 = arith.cmpi sge, %0, %3 : vector<128x4xi32>
    %c1_i32 = arith.constant 1 : i32
    %5 = vector.broadcast %c1_i32 : i32 to vector<128x4xi32>
    %6 = arith.addi %1, %5 : vector<128x4xi32>
    %c32_i32_0 = arith.constant 32 : i32
    %7 = vector.broadcast %c32_i32_0 : i32 to vector<128x4xi32>
    %8 = arith.muli %6, %7 : vector<128x4xi32>
    %9 = arith.cmpi slt, %0, %8 : vector<128x4xi32>
    %10 = arith.andi %4, %9 : vector<128x4xi1>
    %11 = arith.extui %10 : vector<128x4xi1> to vector<128x4xi32>
    %12 = arith.sitofp %11 : vector<128x4xi32> to vector<128x4xf32>
    %13 = tpu.iota {dimensions = array<i32: 0>} : vector<4x128xi32>
    %14 = tpu.iota {dimensions = array<i32: 1>} : vector<4x128xi32>
    %c32_i32_1 = arith.constant 32 : i32
    %15 = vector.broadcast %c32_i32_1 : i32 to vector<4x128xi32>
    %16 = arith.muli %13, %15 : vector<4x128xi32>
    %17 = arith.cmpi sge, %14, %16 : vector<4x128xi32>
    %c1_i32_2 = arith.constant 1 : i32
    %18 = vector.broadcast %c1_i32_2 : i32 to vector<4x128xi32>
    %19 = arith.addi %13, %18 : vector<4x128xi32>
    %c32_i32_3 = arith.constant 32 : i32
    %20 = vector.broadcast %c32_i32_3 : i32 to vector<4x128xi32>
    %21 = arith.muli %19, %20 : vector<4x128xi32>
    %22 = arith.cmpi slt, %14, %21 : vector<4x128xi32>
    %23 = arith.andi %17, %22 : vector<4x128xi1>
    %24 = arith.extui %23 : vector<4x128xi1> to vector<4x128xi32>
    %25 = arith.sitofp %24 : vector<4x128xi32> to vector<4x128xf32>
    %c0_i32 = arith.constant 0 : i32
    %26 = arith.cmpi eq, %arg0, %c0_i32 : i32
    %c0_i32_4 = arith.constant 0 : i32
    %27 = arith.cmpi eq, %arg1, %c0_i32_4 : i32
    %28 = arith.andi %26, %27 : i1
    %29 = arith.extui %28 : i1 to i32
    %c0_i32_5 = arith.constant 0 : i32
    %30 = arith.cmpi ne, %29, %c0_i32_5 : i32
    scf.if %30 {
      %c0_27 = arith.constant 0 : index
      %c0_28 = arith.constant 0 : index
      %71 = vector.load %arg4[%c0_27, %c0_28] : memref<16x128xf32, #tpu.memory_space<vmem>>, vector<16x128xf32>
      %72 = arith.mulf %71, %71 : vector<16x128xf32>
      %cst_29 = arith.constant dense<0.000000e+00> : vector<16x4xf32>
      %73 = tpu.matmul %72, %12, %cst_29 {dimension_numbers = #tpu.dot_dimension_numbers<[1], [0], [0], [1], [0, 0, 1, 1], [], []>, precision = #tpu.contract_precision<fp32>} : vector<16x128xf32>, vector<128x4xf32>, vector<16x4xf32> -> vector<16x4xf32>
      %74 = math.sqrt %73 : vector<16x4xf32>
      %cst_30 = arith.constant 9.99999996E-13 : f32
      %75 = vector.broadcast %cst_30 : f32 to vector<16x4xf32>
      %76 = arith.maximumf %74, %75 : vector<16x4xf32>
      %cst_31 = arith.constant 1.000000e+00 : f32
      %77 = vector.broadcast %cst_31 : f32 to vector<16x4xf32>
      %78 = arith.divf %77, %76 : vector<16x4xf32>
      %cst_32 = arith.constant dense<0.000000e+00> : vector<16x128xf32>
      %79 = tpu.matmul %78, %25, %cst_32 {dimension_numbers = #tpu.dot_dimension_numbers<[1], [0], [0], [1], [0, 0, 1, 1], [], []>, precision = #tpu.contract_precision<fp32>} : vector<16x4xf32>, vector<4x128xf32>, vector<16x128xf32> -> vector<16x128xf32>
      %80 = arith.mulf %71, %79 : vector<16x128xf32>
      %c0_33 = arith.constant 0 : index
      %c0_34 = arith.constant 0 : index
      %81 = vector.load %arg6[%c0_33, %c0_34] : memref<16x128xf32, #tpu.memory_space<vmem>>, vector<16x128xf32>
      tpu.vector_store %arg6[%c0_33, %c0_34], %80 {strides = array<i32>} : memref<16x128xf32, #tpu.memory_space<vmem>>, vector<16x128xf32>,
      %c0_35 = arith.constant 0 : index
      %c0_36 = arith.constant 0 : index
      %82 = vector.load %arg5[%c0_35, %c0_36] : memref<16x128xf32, #tpu.memory_space<vmem>>, vector<16x128xf32>
      tpu.vector_store %arg5[%c0_35, %c0_36], %80 {strides = array<i32>} : memref<16x128xf32, #tpu.memory_space<vmem>>, vector<16x128xf32>,
    } else {
    }
    %c0_i32_6 = arith.constant 0 : i32
    %31 = arith.cmpi eq, %arg1, %c0_i32_6 : i32
    %32 = arith.extui %31 : i1 to i32
    %c0_i32_7 = arith.constant 0 : i32
    %33 = arith.cmpi ne, %32, %c0_i32_7 : i32
    scf.if %33 {
      %cst_27 = arith.constant 0.000000e+00 : f32
      %71 = vector.broadcast %cst_27 : f32 to vector<16x128xf32>
      %c0_28 = arith.constant 0 : index
      %c0_29 = arith.constant 0 : index
      %72 = vector.load %arg7[%c0_28, %c0_29] : memref<16x128xf32, #tpu.memory_space<vmem>>, vector<16x128xf32>
      tpu.vector_store %arg7[%c0_28, %c0_29], %71 {strides = array<i32>} : memref<16x128xf32, #tpu.memory_space<vmem>>, vector<16x128xf32>,
    } else {
    }
    %34 = tpu.iota {dimensions = array<i32: 1>} : vector<16x16xi32>
    %c0 = arith.constant 0 : index
    %c0_8 = arith.constant 0 : index
    %35 = vector.load %arg2[%c0, %c0_8] : memref<16x1xi32, #tpu.memory_space<vmem>>, vector<16x1xi32>
    %36 = vector.broadcast %35 : vector<16x1xi32> to vector<16x16xi32>
    %37 = arith.cmpi eq, %36, %34 : vector<16x16xi32>
    %38 = arith.extui %37 : vector<16x16xi1> to vector<16x16xi32>
    %39 = arith.sitofp %38 : vector<16x16xi32> to vector<16x16xf32>
    %c0_9 = arith.constant 0 : index
    %c0_10 = arith.constant 0 : index
    %40 = vector.load %arg3[%c0_9, %c0_10] : memref<16x1xi32, #tpu.memory_space<vmem>>, vector<16x1xi32>
    %41 = vector.broadcast %40 : vector<16x1xi32> to vector<16x16xi32>
    %42 = arith.cmpi eq, %41, %34 : vector<16x16xi32>
    %43 = arith.extui %42 : vector<16x16xi1> to vector<16x16xi32>
    %44 = arith.sitofp %43 : vector<16x16xi32> to vector<16x16xf32>
    %c0_11 = arith.constant 0 : index
    %c0_12 = arith.constant 0 : index
    %45 = vector.load %arg6[%c0_11, %c0_12] : memref<16x128xf32, #tpu.memory_space<vmem>>, vector<16x128xf32>
    %cst = arith.constant dense<0.000000e+00> : vector<16x128xf32>
    %46 = tpu.matmul %39, %45, %cst {dimension_numbers = #tpu.dot_dimension_numbers<[1], [0], [0], [1], [0, 0, 1, 1], [], []>, precision = #tpu.contract_precision<fp32>} : vector<16x16xf32>, vector<16x128xf32>, vector<16x128xf32> -> vector<16x128xf32>
    %c0_13 = arith.constant 0 : index
    %c0_14 = arith.constant 0 : index
    %47 = vector.load %arg5[%c0_13, %c0_14] : memref<16x128xf32, #tpu.memory_space<vmem>>, vector<16x128xf32>
    %cst_15 = arith.constant dense<0.000000e+00> : vector<16x128xf32>
    %48 = tpu.matmul %44, %47, %cst_15 {dimension_numbers = #tpu.dot_dimension_numbers<[1], [0], [0], [1], [0, 0, 1, 1], [], []>, precision = #tpu.contract_precision<fp32>} : vector<16x16xf32>, vector<16x128xf32>, vector<16x128xf32> -> vector<16x128xf32>
    %49 = arith.mulf %46, %48 : vector<16x128xf32>
    %cst_16 = arith.constant dense<0.000000e+00> : vector<16x4xf32>
    %50 = tpu.matmul %49, %12, %cst_16 {dimension_numbers = #tpu.dot_dimension_numbers<[1], [0], [0], [1], [0, 0, 1, 1], [], []>, precision = #tpu.contract_precision<fp32>} : vector<16x128xf32>, vector<128x4xf32>, vector<16x4xf32> -> vector<16x4xf32>
    %cst_17 = arith.constant 1.000000e+00 : f32
    %51 = vector.broadcast %cst_17 : f32 to vector<16x4xf32>
    %52 = arith.mulf %50, %51 : vector<16x4xf32>
    %cst_18 = arith.constant dense<0xFF800000> : vector<16xf32>
    %53 = vector.multi_reduction <maximumf>, %52, %cst_18 [1] : vector<16x4xf32> to vector<16xf32>
    %54 = vector.shape_cast %53 : vector<16xf32> to vector<16x1xf32>
    %55 = vector.broadcast %54 : vector<16x1xf32> to vector<16x4xf32>
    %56 = arith.subf %52, %55 : vector<16x4xf32>
    %57 = math.exp %56 : vector<16x4xf32>
    %cst_19 = arith.constant dense<0.000000e+00> : vector<16xf32>
    %58 = vector.multi_reduction <add>, %57, %cst_19 [1] : vector<16x4xf32> to vector<16xf32>
    %59 = vector.shape_cast %58 : vector<16xf32> to vector<16x1xf32>
    %60 = vector.broadcast %59 : vector<16x1xf32> to vector<16x4xf32>
    %61 = arith.divf %57, %60 : vector<16x4xf32>
    %cst_20 = arith.constant dense<0.000000e+00> : vector<16x128xf32>
    %62 = tpu.matmul %61, %25, %cst_20 {dimension_numbers = #tpu.dot_dimension_numbers<[1], [0], [0], [1], [0, 0, 1, 1], [], []>, precision = #tpu.contract_precision<fp32>} : vector<16x4xf32>, vector<4x128xf32>, vector<16x128xf32> -> vector<16x128xf32>
    %63 = arith.mulf %46, %62 : vector<16x128xf32>
    %c0_21 = arith.constant 0 : index
    %c0_22 = arith.constant 0 : index
    %64 = vector.load %arg7[%c0_21, %c0_22] : memref<16x128xf32, #tpu.memory_space<vmem>>, vector<16x128xf32>
    %cst_23 = arith.constant dense<0.000000e+00> : vector<16x128xf32>
    %65 = tpu.matmul %44, %63, %cst_23 {dimension_numbers = #tpu.dot_dimension_numbers<[0], [0], [1], [1], [0, 1, 1, 1], [], []>, precision = #tpu.contract_precision<fp32>} : vector<16x16xf32>, vector<16x128xf32>, vector<16x128xf32> -> vector<16x128xf32>
    %66 = arith.addf %64, %65 : vector<16x128xf32>
    %c0_24 = arith.constant 0 : index
    %c0_25 = arith.constant 0 : index
    %67 = vector.load %arg7[%c0_24, %c0_25] : memref<16x128xf32, #tpu.memory_space<vmem>>, vector<16x128xf32>
    tpu.vector_store %arg7[%c0_24, %c0_25], %66 {strides = array<i32>} : memref<16x128xf32, #tpu.memory_space<vmem>>, vector<16x128xf32>,
    %c2_i32 = arith.constant 2 : i32
    %68 = arith.cmpi eq, %arg1, %c2_i32 : i32
    %69 = arith.extui %68 : i1 to i32
    %c0_i32_26 = arith.constant 0 : i32
    %70 = arith.cmpi ne, %69, %c0_i32_26 : i32
    scf.if %70 {
      %c0_27 = arith.constant 0 : index
      %c0_28 = arith.constant 0 : index
      %71 = vector.load %arg7[%c0_27, %c0_28] : memref<16x128xf32, #tpu.memory_space<vmem>>, vector<16x128xf32>
      %c0_29 = arith.constant 0 : index
      %c0_30 = arith.constant 0 : index
      %72 = vector.load %arg6[%c0_29, %c0_30] : memref<16x128xf32, #tpu.memory_space<vmem>>, vector<16x128xf32>
      %73 = arith.addf %71, %72 : vector<16x128xf32>
      %74 = arith.mulf %73, %73 : vector<16x128xf32>
      %cst_31 = arith.constant dense<0.000000e+00> : vector<16x4xf32>
      %75 = tpu.matmul %74, %12, %cst_31 {dimension_numbers = #tpu.dot_dimension_numbers<[1], [0], [0], [1], [0, 0, 1, 1], [], []>, precision = #tpu.contract_precision<fp32>} : vector<16x128xf32>, vector<128x4xf32>, vector<16x4xf32> -> vector<16x4xf32>
      %76 = math.sqrt %75 : vector<16x4xf32>
      %cst_32 = arith.constant 9.99999996E-13 : f32
      %77 = vector.broadcast %cst_32 : f32 to vector<16x4xf32>
      %78 = arith.maximumf %76, %77 : vector<16x4xf32>
      %cst_33 = arith.constant 1.000000e+00 : f32
      %79 = vector.broadcast %cst_33 : f32 to vector<16x4xf32>
      %80 = arith.divf %79, %78 : vector<16x4xf32>
      %cst_34 = arith.constant dense<0.000000e+00> : vector<16x128xf32>
      %81 = tpu.matmul %80, %25, %cst_34 {dimension_numbers = #tpu.dot_dimension_numbers<[1], [0], [0], [1], [0, 0, 1, 1], [], []>, precision = #tpu.contract_precision<fp32>} : vector<16x4xf32>, vector<4x128xf32>, vector<16x128xf32> -> vector<16x128xf32>
      %82 = arith.mulf %73, %81 : vector<16x128xf32>
      %c0_35 = arith.constant 0 : index
      %c0_36 = arith.constant 0 : index
      %83 = vector.load %arg5[%c0_35, %c0_36] : memref<16x128xf32, #tpu.memory_space<vmem>>, vector<16x128xf32>
      tpu.vector_store %arg5[%c0_35, %c0_36], %82 {strides = array<i32>} : memref<16x128xf32, #tpu.memory_space<vmem>>, vector<16x128xf32>,
    } else {
    }
    return
  }
  func.func @transform_0(%arg0: i32, %arg1: i32) -> (i32, i32) {
    %c0_i32 = arith.constant 0 : i32
    %c0_i32_0 = arith.constant 0 : i32
    return %arg1, %c0_i32 : i32, i32
  }
  func.func @transform_1(%arg0: i32, %arg1: i32) -> (i32, i32) {
    %c0_i32 = arith.constant 0 : i32
    %c0_i32_0 = arith.constant 0 : i32
    return %arg1, %c0_i32 : i32, i32
  }
  func.func @transform_2(%arg0: i32, %arg1: i32) -> (i32, i32) {
    %c0_i32 = arith.constant 0 : i32
    %c0_i32_0 = arith.constant 0 : i32
    %c0_i32_1 = arith.constant 0 : i32
    return %c0_i32, %c0_i32_0 : i32, i32
  }
  func.func @transform_3(%arg0: i32, %arg1: i32) -> (i32, i32) {
    %c0_i32 = arith.constant 0 : i32
    %c0_i32_0 = arith.constant 0 : i32
    %c0_i32_1 = arith.constant 0 : i32
    return %c0_i32, %c0_i32_0 : i32, i32
  }
}

</mosaic_0001>

<bundles_post_ra>
// kernel: tpu_custom_call.1
= control target key start
LH: loop header
LB: loop body
LE: loop exit
PB: predicated region body
PF: predicated region fallthrough
CT: control target
= control target key end

     0   :  { %8 = vsyncpa [#allocation5], 0  ;;  %s8034_s12 = smov 0   ;;  %s8036_s13 = smov 0   ;;  %s9517_s0 = inlined_call_operand.vmem [shape: s32[48,1], index: 0, kind: input, shape index: {}]   ;;  %s9518_s1 = inlined_call_operand.vmem [shape: s32[48,1], index: 1, kind: input, shape index: {}]   ;;  %s9519_s2 = inlined_call_operand.vmem [shape: f32[16,128], index: 2, kind: input, shape index: {}]   ;;  %s9520_s3 = inlined_call_operand.hbm [shape: f32[16,128], index: 3, kind: output, shape index: {}]  }
   0x1   :  { %s8038_s14 = smov 0   ;;  %s8040_s15 = smov 0  }
   0x2   :  { %s8042_s16 = smov 0  }
   0x3 LB: > { %s5620_s17 = sadd.s32 4294967295, %s8003_s16   ;;  %s23_s18 = sadd.s32 1, %s7995_s14  ;;  %s8003_s16 = sphi %s8042_s16, %s14_s16   ;;  %s7999_s15 = sphi %s8040_s15, %s9701_s15   ;;  %s7995_s14 = sphi %s8038_s14, %s9700_s14   ;;  %s7991_s13 = sphi %s8036_s13, %s9699_s13   ;;  %s7987_s12 = sphi %s8034_s12, %s9698_s12  }
   0x4   : > { %p24_p0 = scmp.ge.s32.totalorder %s23_s18, 3  ;;  %s26_s19 = sadd.s32 1, %s7999_s15 }
   0x5   : > { %p5623_p1 = scmp.ge.s32.totalorder %s8003_s16, 1  ;;  %p157_p2 = scmp.lt.s32.totalorder %s8003_s16, 10 }
   0x6   : > { %s9703_s18 = smov (%p24_p0, %s23_s18), 0  ;;  %s9705_s19 = smov (!%p24_p0, %s26_s19), %s7999_s15 }
   0x7   : > { %p158_p3 = pnand %p5623_p1, %p157_p2  ;;  %p28_p4 = scmp.ge.s32.totalorder %s9705_s19, 3 }
   0x9   : > { %s9707_s19 = smov (%p28_p4, %s9705_s19), 0  ;;  %161 = sbr.rel (%p158_p3) target bundleno = 2820 (0xb04), region = 32 }
  0x10   : > { %s5624_s20 = sshll.u32 %s7987_s12, 1  ;;  %p303_p5 = scmp.eq.s32.totalorder %s7991_s13, 0  ;;  %v193_v0 = vlaneseq  ;;  %v9561_v18 = vmov 0  ;;  %v9564_v20 = vmov 0  ;;  %v9567_v21 = vmov 0 }
  0x11   : > { %p182_p6 = scmp.lt.s32.totalorder %s5624_s20, 5  ;;  %p304_p7 = scmp.eq.s32.totalorder %s7987_s12, 0  ;;  %v9528_v22 = vmov 0.0   ;;  %v9570_v27 = vmov 0  ;;  %v9573_v29 = vmov 0  ;;  %v9577_v33 = vmov 0 }
  0x12   : > { %v8073_v1 = vand.u32 127, %v193_v0  ;;  %v8085_v2 = vshrl.u32 %v193_v0, 7  ;;  %v9581_v36 = vmov 0  ;;  %v9585_v38 = vmov 0 }
  0x13   : > { %s9709_s20 = smov (!%p182_p6, %s5624_s20), 5  ;;  %p8069_p8 = pnand %p304_p7, %p303_p5  ;;  %v9591_v41 = vmov 0  ;;  %v9597_v44 = vmov 0  ;;  %v9603_v46 = vmov 0  ;;  %v9608_v48 = vmov 0 }
  0x14   : > { %s5625_s22 = sshll.u32 %s9709_s20, 3  ;;  %v8088_v3 = vmul.u32 32, %v8073_v1  ;;  %v229_v4 = vadd.s32 1, %v8073_v1  ;;  %v195_v5 = vadd.s32 8, %v8085_v2  ;;  %v196_v6 = vadd.s32 16, %v8085_v2  ;;  %v8344_v59 = vld [vmem:[%s9519_s2] sm:$0xff] (!%p8069_p8) }
  0x15   : > { %s8078_s25 = scalar_lea.vmem %s9517_s0, %s5625_s22  ;;  %s8083_s28 = scalar_lea.vmem %s9518_s1, %s5625_s22  ;;  %v197_v7 = vadd.s32 24, %v8085_v2  ;;  %v198_v8 = vadd.s32 32, %v8085_v2  ;;  %v199_v10 = vadd.s32 40, %v8085_v2  ;;  %v200_v11 = vadd.s32 48, %v8085_v2 }
  0x16   : > { %vm213_vm0 = vcmp.ge.s32.totalorder %v8085_v2, %v8088_v3  ;;  %v8097_v9 = vmul.u32 32, %v229_v4  ;;  %v201_v12 = vadd.s32 56, %v8085_v2  ;;  %vm214_vm1 = vcmp.ge.s32.totalorder %v195_v5, %v8088_v3 }
  0x17   : > { %vm215_vm2 = vcmp.ge.s32.totalorder %v196_v6, %v8088_v3  ;;  %v202_v13 = vadd.s32 64, %v8085_v2  ;;  %v203_v14 = vadd.s32 72, %v8085_v2  ;;  %vm216_vm6 = vcmp.ge.s32.totalorder %v197_v7, %v8088_v3 }
  0x18   : > { %vm231_vm3 = vcmp.lt.s32.totalorder %v8085_v2, %v8097_v9  ;;  %vm232_vm4 = vcmp.lt.s32.totalorder %v195_v5, %v8097_v9  ;;  %vm233_vm5 = vcmp.lt.s32.totalorder %v196_v6, %v8097_v9  ;;  %vm234_vm7 = vcmp.lt.s32.totalorder %v197_v7, %v8097_v9 }
  0x19   : > { %vm8112_vm8 = vmand %vm213_vm0, %vm231_vm3  ;;  %v204_v16 = vadd.s32 80, %v8085_v2  ;;  %v205_v17 = vadd.s32 88, %v8085_v2  ;;  %vm217_vm9 = vcmp.ge.s32.totalorder %v198_v8, %v8088_v3  ;;  %vm235_vm10 = vcmp.lt.s32.totalorder %v198_v8, %v8097_v9 }
  0x1a   : > { %vm8120_vm11 = vmand %vm214_vm1, %vm232_vm4  ;;  %v206_v19 = vadd.s32 96, %v8085_v2  ;;  %vm218_vm12 = vcmp.ge.s32.totalorder %v199_v10, %v8088_v3  ;;  %vm219_vm13 = vcmp.ge.s32.totalorder %v200_v11, %v8088_v3  ;;  %vm236_vm14 = vcmp.lt.s32.totalorder %v199_v10, %v8097_v9 }
  0x1b   : > { %v9562_v18 = vsel %vm8120_vm11, 4294967295, %v9561_v18  ;;  %vm8132_vm15 = vmand %vm215_vm2, %vm233_vm5  ;;  %vm237_vm0 = vcmp.lt.s32.totalorder %v200_v11, %v8097_v9  ;;  %v8144_v23 = vsel %vm8112_vm8, 1.0, %v9528_v22  ;;  %v8149_v24 = vsel %vm8120_vm11, 1.0, %v9528_v22 }
  0x1c   : > { %9563 = vst [vmem:[#allocation7_spill] sm:$0xff] %v9562_v18  ;;  %v9565_v20 = vsel %vm8132_vm15, 4294967295, %v9564_v20  ;;  %vm8137_vm1 = vmand %vm216_vm6, %vm234_vm7  ;;  %v8154_v25 = vsel %vm8132_vm15, 1.0, %v9528_v22  ;;  %v207_v26 = vadd.s32 104, %v8085_v2  ;;  %vm220_vm2 = vcmp.ge.s32.totalorder %v201_v12, %v8088_v3 }
  0x1d   : > { %9566 = vst [vmem:[#allocation8_spill] sm:$0xff] %v9565_v20  ;;  %v9568_v21 = vsel %vm8137_vm1, 4294967295, %v9567_v21  ;;  %vm238_vm3 = vcmp.lt.s32.totalorder %v201_v12, %v8097_v9  ;;  %vm8163_vm4 = vmand %vm217_vm9, %vm235_vm10  ;;  %v8170_v28 = vsel %vm8137_vm1, 1.0, %v9528_v22  ;;  %vm221_vm5 = vcmp.ge.s32.totalorder %v202_v13, %v8088_v3 }
  0x1e   : > { %9569 = vst [vmem:[#allocation9_spill] sm:$0xff] %v9568_v21  ;;  %v9571_v27 = vsel %vm8163_vm4, 4294967295, %v9570_v27  ;;  %vm239_vm6 = vcmp.lt.s32.totalorder %v202_v13, %v8097_v9  ;;  %vm8178_vm7 = vmand %vm218_vm12, %vm236_vm14  ;;  %v8185_v30 = vsel %vm8163_vm4, 1.0, %v9528_v22  ;;  %v297_v31 = vadd.s32 1, %v8085_v2 }
  0x1f   : > { %9572 = vst [vmem:[#allocation10_spill] sm:$0xff] %v9571_v27  ;;  %v9574_v29 = vsel %vm8178_vm7, 4294967295, %v9573_v29  ;;  %9576 = vst [vmem:[#allocation12_spill] sm:$0xff] %v8185_v30  ;;  %v208_v32 = vadd.s32 112, %v8085_v2  ;;  %v8202_v34 = vsel %vm8178_vm7, 1.0, %v9528_v22  ;;  %v209_v35 = vadd.s32 120, %v8085_v2 }
  0x20   : > { %9575 = vst [vmem:[#allocation11_spill] sm:$0xff] %v9574_v29  ;;  %vm8195_vm12 = vmand %vm219_vm13, %vm237_vm0  ;;  %v295_v40 = vmul.u32 32, %v8085_v2  ;;  %vm9589_vm13 = vcmp.lt.s32.totalorder %v203_v14, %v8097_v9  ;;  %vm9590_vm0 = vcmp.ge.s32.totalorder %v203_v14, %v8088_v3  ;;  %v298_v43 = vmul.u32 32, %v297_v31 }
  0x21   : > { %v9578_v33 = vsel %vm8195_vm12, 4294967295, %v9577_v33  ;;  %9580 = vst [vmem:[#allocation14_spill] sm:$0xff] %v8202_v34  ;;  %vm8211_vm10 = vmand %vm220_vm2, %vm238_vm3  ;;  %v8218_v37 = vsel %vm8195_vm12, 1.0, %v9528_v22  ;;  %vm243_vm3 = vcmp.lt.s32.totalorder %v206_v19, %v8097_v9  ;;  %vm9595_vm2 = vcmp.lt.s32.totalorder %v204_v16, %v8097_v9 }
  0x22   : > { %9579 = vst [vmem:[#allocation13_spill] sm:$0xff] %v9578_v33  ;;  %v9582_v36 = vsel %vm8211_vm10, 4294967295, %v9581_v36  ;;  %9584 = vst [vmem:[#allocation16_spill] sm:$0xff] %v8218_v37  ;;  %v8233_v39 = vsel %vm8211_vm10, 1.0, %v9528_v22  ;;  %vm9596_vm10 = vcmp.ge.s32.totalorder %v204_v16, %v8088_v3  ;;  %vm9602_vm7 = vcmp.ge.s32.totalorder %v205_v17, %v8088_v3 }
  0x23   : > { %9583 = vst [vmem:[#allocation15_spill] sm:$0xff] %v9582_v36  ;;  %vm8226_vm14 = vmand %vm221_vm5, %vm239_vm6  ;;  %vm226_vm5 = vcmp.ge.s32.totalorder %v207_v26, %v8088_v3  ;;  %vm244_vm6 = vcmp.lt.s32.totalorder %v207_v26, %v8097_v9  ;;  %v9612_v50 = vmov 0  ;;  %v9615_v52 = vmov 0 }
  0x24   : > { %v9586_v38 = vsel %vm8226_vm14, 4294967295, %v9585_v38  ;;  %9588 = vst [vmem:[#allocation18_spill] sm:$0xff] %v8233_v39  ;;  %vm8242_vm9 = vmand %vm9590_vm0, %vm9589_vm13  ;;  %v8249_v42 = vsel %vm8226_vm14, 1.0, %v9528_v22  ;;  %vm227_vm13 = vcmp.ge.s32.totalorder %v208_v32, %v8088_v3  ;;  %vm245_vm0 = vcmp.lt.s32.totalorder %v208_v32, %v8097_v9 }
  0x25   : > { %9587 = vst [vmem:[#allocation17_spill] sm:$0xff] %v9586_v38  ;;  %v9592_v41 = vsel %vm8242_vm9, 4294967295, %v9591_v41  ;;  %9594 = vst [vmem:[#allocation20_spill] sm:$0xff] %v8249_v42  ;;  %v8264_v45 = vsel %vm8242_vm9, 1.0, %v9528_v22  ;;  %vm9601_vm14 = vcmp.lt.s32.totalorder %v205_v17, %v8097_v9  ;;  %vm9607_vm9 = vcmp.ge.s32.totalorder %v206_v19, %v8088_v3 }
  0x26   : > { %9593 = vst [vmem:[#allocation19_spill] sm:$0xff] %v9592_v41  ;;  %vm8257_vm12 = vmand %vm9596_vm10, %vm9595_vm2  ;;  %vm228_vm10 = vcmp.ge.s32.totalorder %v209_v35, %v8088_v3  ;;  %vm246_vm2 = vcmp.lt.s32.totalorder %v209_v35, %v8097_v9  ;;  %v9618_v54 = vmov 0  ;;  %v9537_v60 = vmov (!%p8069_p8), 1.0|1.0   ;;  %v8396_v3 = vld [vmem:[%s9519_s2 + $0x8] sm:$0xff] (!%p8069_p8) }
  0x27   : > { %v9598_v44 = vsel %vm8257_vm12, 4294967295, %v9597_v44  ;;  %9600 = vst [vmem:[#allocation22_spill] sm:$0xff] %v8264_v45  ;;  %vm8272_vm4 = vmand %vm9602_vm7, %vm9601_vm14  ;;  %v8279_v47 = vsel %vm8257_vm12, 1.0, %v9528_v22  ;;  %vm296_vm14 = vcmp.ge.s32.totalorder %v8073_v1, %v295_v40  ;;  %v311_v62 = vmul.f32 (!%p8069_p8), %v8344_v59, %v8344_v59 }
  0x28   : > { %9599 = vst [vmem:[#allocation21_spill] sm:$0xff] %v9598_v44  ;;  %v9604_v46 = vsel %vm8272_vm4, 4294967295, %v9603_v46  ;;  %9606 = vst [vmem:[#allocation24_spill] sm:$0xff] %v8279_v47  ;;  %v8292_v49 = vsel %vm8272_vm4, 1.0, %v9528_v22  ;;  %v312_v7 = vmul.f32 (!%p8069_p8), %v8396_v3, %v8396_v3  ;;  %v8424_v8 = vsub.f32 (!%p8069_p8), %v8144_v23, %v8144_v23 }
  0x29   : > { %9605 = vst [vmem:[#allocation23_spill] sm:$0xff] %v9604_v46  ;;  %vm8285_vm1 = vmand %vm9607_vm9, %vm243_vm3  ;;  %vm299_vm9 = vcmp.lt.s32.totalorder %v8073_v1, %v298_v43  ;;  %v8374_v63 = vand.u32 (!%p8069_p8), 4294901760, %v311_v62  ;;  %v8428_v9 = vsub.f32 (!%p8069_p8), %v8149_v24, %v8149_v24  ;;  %v8456_v16 = vsub.f32 (!%p8069_p8), %v8154_v25, %v8154_v25 }
  0x2a   : > { %v9609_v48 = vsel %vm8285_vm1, 4294967295, %v9608_v48  ;;  %9611 = vst [vmem:[#allocation26_spill] sm:$0xff] %v8292_v49  ;;  %vm8294_vm7 = vmand %vm226_vm5, %vm244_vm6  ;;  %v8301_v51 = vsel %vm8285_vm1, 1.0, %v9528_v22  ;;  %308 = sbr.rel (%p8069_p8) target bundleno = 634 (0x27a), region = 36  ;;  %v8444_v12 = vand.u32 (!%p8069_p8), 4294901760, %v312_v7  ;;  %v417_v13 = vand.u32 (!%p8069_p8), 4294901760, %v8424_v8 }
  0x2b   : > { %9610 = vst [vmem:[#allocation25_spill] sm:$0xff] %v9609_v48  ;;  %v9613_v50 = vsel %vm8294_vm7, 4294967295, %v9612_v50  ;;  %vm8305_vm3 = vmand %vm227_vm13, %vm245_vm0  ;;  %v8312_v53 = vsel %vm8294_vm7, 1.0, %v9528_v22  ;;  %vm9625_vm0 = vnez (!%p8069_p8), %v9568_v21  ;;  %v8385_v2 = vsub.f32 (!%p8069_p8), %v311_v62, %v8374_v63 }
  0x2c   : > { %9614 = vst [vmem:[#allocation27_spill] sm:$0xff] %v9613_v50  ;;  %v9616_v52 = vsel %vm8305_vm3, 4294967295, %v9615_v52  ;;  %vm8314_vm5 = vmand %vm228_vm10, %vm246_vm2  ;;  %v8321_v55 = vsel %vm8305_vm3, 1.0, %v9528_v22  ;;  %vm9628_vm2 = vnez (!%p8069_p8), %v9571_v27  ;;  %v424_v14 = vand.u32 (!%p8069_p8), 4294901760, %v8428_v9 }
  0x2d   : > { %9617 = vst [vmem:[#allocation28_spill] sm:$0xff] %v9616_v52  ;;  %v9619_v54 = vsel %vm8314_vm5, 4294967295, %v9618_v54  ;;  %9621 = vst [vmem:[#allocation30_spill] sm:$0xff] %v8321_v55  ;;  %v8326_v56 = vsel %vm8314_vm5, 1.0, %v9528_v22  ;;  %v396_v4 = vand.u32 (!%p8069_p8), 4294901760, %v8385_v2  ;;  %v8466_v17 = vsub.f32 (!%p8069_p8), %v8170_v28, %v8170_v28 }
  0x2e   : > { %9620 = vst [vmem:[#allocation29_spill] sm:$0xff] %v9619_v54  ;;  %9622 = vst [vmem:[#allocation31_spill] sm:$0xff] %v8326_v56  ;;  %v8477_v26 = vsub.f32 (!%p8069_p8), %v312_v7, %v8444_v12  ;;  %v418_v31 = vsub.f32 (!%p8069_p8), %v8424_v8, %v417_v13  ;;  %v425_v32 = vsub.f32 (!%p8069_p8), %v8428_v9, %v424_v14  ;;  %v431_v35 = vand.u32 (!%p8069_p8), 4294901760, %v8456_v16 }
  0x2f   : > { %vm300_vm6 = vmand %vm296_vm14, %vm299_vm9  ;;  %vm9629_vm14 = vnez (!%p8069_p8), %v9574_v29  ;;  %v397_v6 = vsub.f32 (!%p8069_p8), %v8385_v2, %v396_v4  ;;  %6407 = vmatprep.mubr.f32.mxu0 (!%p8069_p8), %v396_v4  ;;  %v438_v40 = vand.u32 (!%p8069_p8), 4294901760, %v8466_v17  ;;  %v8497_v43 = vsub.f32 (!%p8069_p8), %v8185_v30, %v8185_v30 }
  0x30   : > { %v8329_v57 = vsel %vm300_vm6, 1.0, %v9528_v22  ;;  %vm8337_vm13 = vmpackc.low (!%p8069_p8), %vm8120_vm11, %vm8112_vm8  ;;  %vm9632_vm6 = vnez (!%p8069_p8), %v9578_v33  ;;  %v8501_v62 = vsub.f32 (!%p8069_p8), %v8202_v34, %v8202_v34  ;;  %v8514_v7 = vsub.f32 (!%p8069_p8), %v8218_v37, %v8218_v37 }
  0x31   : > { %7117 = vmatprep.subr.msk.bf16.mxu1 %vm8337_vm13, %v9537_v60  ;;  %7213 = vmatprep.subr.msk.bf16.mxu0 %vm8337_vm13, %v9537_v60  ;;  %vm8356_vm10 = vmpackc.low %vm9625_vm0, %vm8132_vm15  ;;  %vm9633_vm0 = vnez %v9582_v36  ;;  %v398_v10 = vand.u32 4294901760, %v397_v6  ;;  %v406_v6 = vand.u32 4294901760, %v8477_v26  ;;  %v419_v22 = vand.u32 4294901760, %v418_v31 }
  0x32   : > { %7119 = vmatpush3.bf16.msk.msra.mxu1 %vm8337_vm13, %v9537_v60  ;;  %7215 = vmatpush3.bf16.msk.msra.mxu0 %vm8337_vm13, %v9537_v60  ;;  %vm8380_vm9 = vmpackc.low %vm9629_vm14, %vm9628_vm2  ;;  %vm9636_vm14 = vnez %v9586_v38  ;;  %v426_v50 = vand.u32 4294901760, %v425_v32  ;;  %v432_v48 = vsub.f32 %v8456_v16, %v431_v35  ;;  %v439_v46 = vsub.f32 %v8466_v17, %v438_v40 }
  0x33   : > { %7121 = vmatprep.subr.msk.bf16.mxu1 %vm8356_vm10, %v9537_v60  ;;  %7217 = vmatprep.subr.msk.bf16.mxu0 %vm8356_vm10, %v9537_v60  ;;  %vm8409_vm2 = vmpackc.low %vm9633_vm0, %vm9632_vm6  ;;  %vm9637_vm6 = vnez %v9592_v41  ;;  %v445_v44 = vand.u32 4294901760, %v8497_v43  ;;  %v452_v41 = vand.u32 4294901760, %v8501_v62  ;;  %v407_v32 = vsub.f32 %v8477_v26, %v406_v6 }
  0x34   : > { %vm8440_vm0 = vmpackc.low %vm9637_vm6, %vm9636_vm14  ;;  %6302 = vmatprep.mubr.f32.mxu1 %v398_v10  ;;  %v8518_v10 = vsub.f32 %v8233_v39, %v8233_v39  ;;  %v459_v38 = vand.u32 4294901760, %v8514_v7  ;;  %v9646_v36 = vmov 1.0|1.0   ;;  %v7148_v52 = vpack.c.bf16 %v426_v50, %v419_v22 }
  0x35   : > { %vm8472_vm14 = vmpackc.low %vm8272_vm4, %vm8257_vm12  ;;  %v7244_v54 = vpack.c.bf16 %v424_v14, %v417_v13  ;;  %v433_v33 = vand.u32 4294901760, %v432_v48  ;;  %v8555_v39 = vsub.f32 %v8249_v42, %v8249_v42  ;;  %v440_v37 = vand.u32 4294901760, %v439_v46 }
  0x36   : > { %7123 = vmatpush3.bf16.msk.msra.mxu1 %vm8356_vm10, %v9537_v60  ;;  %7219 = vmatpush3.bf16.msk.msra.mxu0 %vm8356_vm10, %v9537_v60  ;;  %vm8507_vm6 = vmpackc.low %vm8294_vm7, %vm8285_vm1  ;;  %v446_v29 = vsub.f32 %v8497_v43, %v445_v44  ;;  %v453_v27 = vsub.f32 %v8501_v62, %v452_v41  ;;  %v8567_v22 = vsub.f32 %v8264_v45, %v8264_v45  ;;  %v408_v48 = vand.u32 4294901760, %v407_v32 }
  0x37   : > { %7125 = vmatprep.subr.msk.bf16.mxu1 %vm8380_vm9, %v9537_v60  ;;  %7221 = vmatprep.subr.msk.bf16.mxu0 %vm8380_vm9, %v9537_v60  ;;  %vm8540_vm7 = vmpackc.low %vm8314_vm5, %vm8305_vm3  ;;  %v460_v50 = vsub.f32 %v8514_v7, %v459_v38  ;;  %v7248_v46 = vpack.c.bf16 %v438_v40, %v431_v35  ;;  %v473_v14 = vand.u32 4294901760, %v8555_v39  ;;  %v8580_v45 = vsub.f32 %v8279_v47, %v8279_v47 }
  0x38   : > { %v8584_v32 = vsub.f32 %v8292_v49, %v8292_v49  ;;  %v7152_v42 = vpack.c.bf16 %v440_v37, %v433_v33  ;;  %v447_v34 = vand.u32 4294901760, %v446_v29  ;;  %v454_v30 = vand.u32 4294901760, %v453_v27 }
  0x39   : > { %v480_v21 = vand.u32 4294901760, %v8567_v22  ;;  %v7252_v35 = vpack.c.bf16 %v452_v41, %v445_v44  ;;  %v461_v40 = vand.u32 4294901760, %v460_v50  ;;  %v474_v47 = vsub.f32 %v8555_v39, %v473_v14 }
  0x3a   : > { %7127 = vmatpush3.bf16.msk.msra.mxu1 %vm8380_vm9, %v9537_v60  ;;  %7223 = vmatpush3.bf16.msk.msra.mxu0 %vm8380_vm9, %v9537_v60  ;;  %v487_v18 = vand.u32 4294901760, %v8580_v45  ;;  %v494_v49 = vand.u32 4294901760, %v8584_v32  ;;  %v8592_v33 = vsub.f32 %v8301_v51, %v8301_v51  ;;  %v7156_v27 = vpack.c.bf16 %v454_v30, %v447_v34 }
  0x3b   : > { %7129 = vmatprep.subr.msk.bf16.mxu1 %vm8409_vm2, %v9537_v60  ;;  %7225 = vmatprep.subr.msk.bf16.mxu0 %vm8409_vm2, %v9537_v60  ;;  %v481_v29 = vsub.f32 %v8567_v22, %v480_v21  ;;  %v8597_v37 = vsub.f32 %v8312_v53, %v8312_v53  ;;  %v8607_v50 = vsub.f32 %v8321_v55, %v8321_v55 }
  0x3c   : > { %v501_v30 = vand.u32 4294901760, %v8592_v33  ;;  %v7192_v58 = vpack.c.bf16 %v8518_v10, %v8514_v7  ;;  %v7196_v61 = vpack.c.bf16 %v8567_v22, %v8555_v39 }
  0x3d   : > { %v482_v34 = vand.u32 4294901760, %v481_v29  ;;  %v7204_v39 = vpack.c.bf16 %v8597_v37, %v8592_v33 }
  0x3e   : > { %7131 = vmatpush3.bf16.msk.msra.mxu1 %vm8409_vm2, %v9537_v60  ;;  %7227 = vmatpush3.bf16.msk.msra.mxu0 %vm8409_vm2, %v9537_v60 }
  0x3f   : > { %7133 = vmatprep.subr.msk.bf16.mxu1 %vm8440_vm0, %v9537_v60  ;;  %7229 = vmatprep.subr.msk.bf16.mxu0 %vm8440_vm0, %v9537_v60 }
  0x42   : > { %7135 = vmatpush3.bf16.msk.msra.mxu1 %vm8440_vm0, %v9537_v60  ;;  %7231 = vmatpush3.bf16.msk.msra.mxu0 %vm8440_vm0, %v9537_v60 }
  0x43   : > { %7137 = vmatprep.subr.msk.bf16.mxu1 %vm8472_vm14, %v9537_v60  ;;  %7233 = vmatprep.subr.msk.bf16.mxu0 %vm8472_vm14, %v9537_v60 }
  0x46   : > { %7139 = vmatpush3.bf16.msk.msra.mxu1 %vm8472_vm14, %v9537_v60  ;;  %7235 = vmatpush3.bf16.msk.msra.mxu0 %vm8472_vm14, %v9537_v60 }
  0x47   : > { %7141 = vmatprep.subr.msk.bf16.mxu1 %vm8507_vm6, %v9537_v60  ;;  %7237 = vmatprep.subr.msk.bf16.mxu0 %vm8507_vm6, %v9537_v60  ;;  %v466_v60 = vand.u32 4294901760, %v8518_v10 }
  0x49   : > { %v467_v13 = vsub.f32 %v8518_v10, %v466_v60  ;;  %v7256_v44 = vpack.c.bf16 %v466_v60, %v459_v38  ;;  %v7260_v38 = vpack.c.bf16 %v480_v21, %v473_v14  ;;  %v502_v60 = vsub.f32 %v8592_v33, %v501_v30 }
  0x4a   : > { %7143 = vmatpush3.bf16.msk.msra.mxu1 %vm8507_vm6, %v9646_v36  ;;  %7239 = vmatpush3.bf16.msk.msra.mxu0 %vm8507_vm6, %v9646_v36 }
  0x4b   : > { %7145 = vmatprep.subr.msk.bf16.mxu1 %vm8540_vm7, %v9646_v36  ;;  %7241 = vmatprep.subr.msk.bf16.mxu0 %vm8540_vm7, %v9646_v36  ;;  %v468_v20 = vand.u32 4294901760, %v467_v13  ;;  %v503_v55 = vand.u32 4294901760, %v502_v60 }
  0x4d   : > { %v7160_v41 = vpack.c.bf16 %v468_v20, %v461_v40  ;;  %v8611_v20 = vsub.f32 %v8326_v56, %v8326_v56  ;;  %v515_v40 = vand.u32 4294901760, %v8607_v50  ;;  %v7264_v56 = vpack.c.bf16 %v494_v49, %v487_v18 }
  0x4e   : > { %7147 = vmatpush3.bf16.msk.msra.mxu1 %vm8540_vm7, %v9646_v36  ;;  %7243 = vmatpush3.bf16.msk.msra.mxu0 %vm8540_vm7, %v9646_v36 }
  0x4f   : > { %7149 = vmatprep.subr.bf16.mxu1 %v7148_v52  ;;  %7245 = vmatprep.subr.bf16.mxu0 %v7244_v54  ;;  %v522_v29 = vand.u32 4294901760, %v8611_v20 }
  0x51   : > { %6303 = vmatmul.mubr.f32.vlgmr.msra.gmra.mrb[0].mxu1 %v408_v48  ;;  %6408 = vmatmul.mubr.f32.vlgmr.msra.gmra.mrb[0].mxu0 %v406_v6  ;;  %v495_v6 = vsub.f32 %v8584_v32, %v494_v49  ;;  %v508_v48 = vand.u32 4294901760, %v8597_v37  ;;  %v7272_v49 = vpack.c.bf16 %v522_v29, %v515_v40 }
  0x52   : > { %7151 = vmatpush3.bf16.msra.mxu1 %v7148_v52  ;;  %7247 = vmatpush3.bf16.msra.mxu0 %v7244_v54  ;;  %v475_v52 = vand.u32 4294901760, %v474_v47  ;;  %v488_v54 = vsub.f32 %v8580_v45, %v487_v18 }
  0x53   : > { %7153 = vmatprep.subr.bf16.mxu1 %v7152_v42  ;;  %7249 = vmatprep.subr.bf16.mxu0 %v7248_v46  ;;  %v496_v47 = vand.u32 4294901760, %v495_v6 }
  0x54   : > { %6337 = vmatprep.mubr.f32.mxu1 %v8374_v63  ;;  %6442 = vmatprep.mubr.f32.mxu0 %v8374_v63  ;;  %v7164_v13 = vpack.c.bf16 %v482_v34, %v475_v52 }
  0x56   : > { %7155 = vmatpush3.bf16.msra.mxu1 %v7152_v42  ;;  %7251 = vmatpush3.bf16.msra.mxu0 %v7248_v46  ;;  %v489_v42 = vand.u32 4294901760, %v488_v54  ;;  %v509_v46 = vsub.f32 %v8597_v37, %v508_v48  ;;  %v7268_v54 = vpack.c.bf16 %v508_v48, %v501_v30 }
  0x57   : > { %7157 = vmatprep.subr.bf16.mxu1 %v7156_v27  ;;  %7253 = vmatprep.subr.bf16.mxu0 %v7252_v35 }
  0x58   : > { %v7168_v21 = vpack.c.bf16 %v496_v47, %v489_v42  ;;  %v510_v14 = vand.u32 4294901760, %v509_v46 }
  0x5a   : > { %7159 = vmatpush3.bf16.msra.mxu1 %v7156_v27  ;;  %7255 = vmatpush3.bf16.msra.mxu0 %v7252_v35  ;;  %v516_v35 = vsub.f32 %v8607_v50, %v515_v40  ;;  %v523_v27 = vsub.f32 %v8611_v20, %v522_v29  ;;  %v7172_v52 = vpack.c.bf16 %v510_v14, %v503_v55 }
  0x5b   : > { %7161 = vmatprep.subr.bf16.mxu1 %v7160_v41  ;;  %7257 = vmatprep.subr.bf16.mxu0 %v7256_v44  ;;  %v7184_v55 = vpack.c.bf16 %v8466_v17, %v8456_v16 }
  0x5c   : > { %v517_v6 = vand.u32 4294901760, %v516_v35  ;;  %v524_v34 = vand.u32 4294901760, %v523_v27 }
  0x5e   : > { %7163 = vmatpush3.bf16.msra.mxu1 %v7160_v41  ;;  %7259 = vmatpush3.bf16.msra.mxu0 %v7256_v44  ;;  %v7176_v18 = vpack.c.bf16 %v524_v34, %v517_v6  ;;  %v7180_v41 = vpack.c.bf16 %v8428_v9, %v8424_v8 }
  0x5f   : > { %7165 = vmatprep.subr.bf16.mxu1 %v7164_v13  ;;  %7261 = vmatprep.subr.bf16.mxu0 %v7260_v38 }
  0x62   : > { %7167 = vmatpush3.bf16.msra.mxu1 %v7164_v13  ;;  %7263 = vmatpush3.bf16.msra.mxu0 %v7260_v38 }
  0x63   : > { %7169 = vmatprep.subr.bf16.mxu1 %v7168_v21  ;;  %7265 = vmatprep.subr.bf16.mxu0 %v7264_v56 }
  0x66   : > { %7171 = vmatpush3.bf16.msra.mxu1 %v7168_v21  ;;  %7267 = vmatpush3.bf16.msra.mxu0 %v7264_v56  ;;  %v7188_v56 = vpack.c.bf16 %v8501_v62, %v8497_v43 }
  0x67   : > { %7173 = vmatprep.subr.bf16.mxu1 %v7172_v52  ;;  %7269 = vmatprep.subr.bf16.mxu0 %v7268_v54 }
  0x6a   : > { %7175 = vmatpush3.bf16.msra.mxu1 %v7172_v52  ;;  %7271 = vmatpush3.bf16.msra.mxu0 %v7268_v54 }
  0x6b   : > { %7177 = vmatprep.subr.bf16.mxu1 %v7176_v18  ;;  %7273 = vmatprep.subr.bf16.mxu0 %v7272_v49 }
  0x6e   : > { %7179 = vmatpush3.bf16.msra.mxu1 %v7176_v18  ;;  %7275 = vmatpush3.bf16.msra.mxu0 %v7272_v49 }
  0x6f   : > { %7181 = vmatprep.subr.bf16.mxu1 %v7180_v41  ;;  %7277 = vmatprep.subr.msk.bf16.mxu0 %vm8337_vm13, %v9646_v36 }
  0x71   : > { %6338 = vmatmul.mubr.f32.vlgmr.msra.gmra.mrb[0].mxu1 %v8444_v12  ;;  %6443 = vmatmul.mubr.f32.vlgmr.msra.gmra.mrb[0].mxu0 %v8444_v12 }
  0x72   : > { %7183 = vmatpush3.bf16.msra.mxu1 %v7180_v41  ;;  %7279 = vmatpush3.bf16.msk.msra.mxu0 %vm8337_vm13, %v9646_v36  ;;  %vm1024_vm13 = vcmask 1043456  }
  0x73   : > { %7185 = vmatprep.subr.bf16.mxu1 %v7184_v55  ;;  %7281 = vmatprep.subr.msk.bf16.mxu0 %vm8356_vm10, %v9646_v36 }
  0x74   : > { %6372 = vmatprep.mubr.f32.mxu1 %v8385_v2  ;;  %6477 = vmatprep.mubr.f32.mxu0 %v8374_v63  ;;  %v7200_v63 = vpack.c.bf16 %v8584_v32, %v8580_v45  ;;  %v7208_v45 = vpack.c.bf16 %v8611_v20, %v8607_v50 }
  0x76   : > { %7187 = vmatpush3.bf16.msra.mxu1 %v7184_v55  ;;  %7283 = vmatpush3.bf16.msk.msra.mxu0 %vm8356_vm10, %v9646_v36 }
  0x77   : > { %7189 = vmatprep.subr.bf16.mxu1 %v7188_v56  ;;  %7285 = vmatprep.subr.msk.bf16.mxu0 %vm8380_vm9, %v9646_v36 }
  0x7a   : > { %7191 = vmatpush3.bf16.msra.mxu1 %v7188_v56  ;;  %7287 = vmatpush3.bf16.msk.msra.mxu0 %vm8380_vm9, %v9646_v36 }
  0x7b   : > { %7193 = vmatprep.subr.bf16.mxu1 %v7192_v58  ;;  %7289 = vmatprep.subr.msk.bf16.mxu0 %vm8409_vm2, %v9646_v36 }
  0x7e   : > { %7195 = vmatpush3.bf16.msra.mxu1 %v7192_v58  ;;  %7291 = vmatpush3.bf16.msk.msra.mxu0 %vm8409_vm2, %v9646_v36 }
  0x7f   : > { %7197 = vmatprep.subr.bf16.mxu1 %v7196_v61  ;;  %7293 = vmatprep.subr.msk.bf16.mxu0 %vm8440_vm0, %v9646_v36 }
  0x82   : > { %7199 = vmatpush3.bf16.msra.mxu1 %v7196_v61  ;;  %7295 = vmatpush3.bf16.msk.msra.mxu0 %vm8440_vm0, %v9646_v36  ;;  %vm1017_vm0 = vcmask 31744  }
  0x83   : > { %7201 = vmatprep.subr.bf16.mxu1 %v7200_v63  ;;  %7297 = vmatprep.subr.msk.bf16.mxu0 %vm8472_vm14, %v9646_v36 }
  0x86   : > { %7203 = vmatpush3.bf16.msra.mxu1 %v7200_v63  ;;  %7299 = vmatpush3.bf16.msk.msra.mxu0 %vm8472_vm14, %v9646_v36 }
  0x87   : > { %7205 = vmatprep.subr.bf16.mxu1 %v7204_v39  ;;  %7301 = vmatprep.subr.msk.bf16.mxu0 %vm8507_vm6, %v9646_v36 }
  0x8a   : > { %7207 = vmatpush3.bf16.msra.mxu1 %v7204_v39  ;;  %7303 = vmatpush3.bf16.msk.msra.mxu0 %vm8507_vm6, %v9646_v36 }
  0x8b   : > { %7209 = vmatprep.subr.bf16.mxu1 %v7208_v45  ;;  %7305 = vmatprep.subr.msk.bf16.mxu0 %vm8540_vm7, %v9646_v36 }
  0x8e   : > { %7211 = vmatpush3.bf16.msra.mxu1 %v7208_v45  ;;  %7307 = vmatpush3.bf16.msk.msra.mxu0 %vm8540_vm7, %v9646_v36  ;;  %v1026_v36 = vsel %vm1024_vm13, %v8329_v57, 0 }
  0x8f   : > { %6495 = vmatprep.subr.msk.mxu1 %vm1024_vm13, %v8329_v57  ;;  %6480 = vmatprep.subr.msk.mxu0 %vm1024_vm13, %v8329_v57  ;;  %v1116_v0 = vsub.f32 %v1026_v36, %v1026_v36 }
  0x91   : > { %6373 = vmatmul.mubr.f32.vlgmr.msra.gmra.mrb[0].mxu1 %v8477_v26  ;;  %6478 = vmatmul.mubr.f32.vlgmr.msra.gmra.mrb[0].mxu0 %v8444_v12  ;;  %v1117_v2 = vand.u32 4294901760, %v1116_v0 }
  0x92   : > { %6496 = vmatpush3.msk.msra.mxu1 %vm1024_vm13, %v8329_v57  ;;  %6481 = vmatpush3.msk.msra.mxu0 %vm1024_vm13, %v8329_v57 }
  0x93   : > { %v1118_v5 = vsub.f32 %v1116_v0, %v1117_v2  ;;  %6500 = vmatprep.subr.mxu1 %v1117_v2 }
  0x95   : > { %v1119_v8 = vand.u32 4294901760, %v1118_v5 }
  0x97   : > { %6485 = vmatprep.subr.mxu0 %v1119_v8 }
 0x164   : > { %v6374_v9 = vpop.f32.mrb[0].mxu1  ;;  %v6479_v11 = vpop.f32.mrb[0].mxu0 }
 0x165   : > { %v7764_v12 = vadd.f32 %v6479_v11, %v6374_v9  ;;  %v671_v16 = vpop.f32.mrb[1].mxu1  ;;  %v987_v17 = vpop.f32.mrb[1].mxu0 }
 0x166   : > { %v7765_v19 = vadd.f32 %v987_v17, %v671_v16 }
 0x167   : > { %7909 = vrsqrt.f32 %v7764_v12  ;;  %vm1006_vm7 = vcmp.eq.f32.partialorder %v7764_v12, inf  ;;  %v1009_v4 = vand.u32 2147483648, %v7764_v12  ;;  %vm1008_vm10 = vcmp.eq.f32.partialorder %v7764_v12, 0.0 }
 0x168   : > { %7911 = vrsqrt.f32 %v7765_v19  ;;  %vm999_vm9 = vcmp.eq.f32.partialorder %v7765_v19, inf  ;;  %v1002_v31 = vand.u32 2147483648, %v7765_v19  ;;  %vm1001_vm2 = vcmp.eq.f32.partialorder %v7765_v19, 0.0 }
 0x171   : > { %v7910_v26 = vpop.eup %7909 }
 0x172   : > { %v7912_v43 = vpop.eup %7911  ;;  %v1005_v62 = vmul.f32 %v7910_v26, %v7764_v12 }
 0x173   : > { %v998_v7 = vmul.f32 %v7912_v43, %v7765_v19 }
 0x174   : > { %v1007_v10 = vsel %vm1006_vm7, %v7764_v12, %v1005_v62 }
 0x175   : > { %v1010_v22 = vsel %vm1008_vm10, %v1009_v4, %v1007_v10  ;;  %v1000_v32 = vsel %vm999_vm9, %v7765_v19, %v998_v7 }
 0x176   : > { %v1012_v33 = vmax.f32 %v1010_v22, 1e-12  ;;  %v1003_v37 = vsel %vm1001_vm2, %v1002_v31, %v1000_v32 }
 0x177   : > { %v1011_v44 = vmax.f32 %v1003_v37, 1e-12 }
 0x178   : > { %7913 = vrcp.f32 %v1012_v33 }
 0x179   : > { %7915 = vrcp.f32 %v1011_v44 }
 0x182   : > { %v7914_v30 = vpop.eup %7913 }
 0x183   : > { %v7916_v48 = vpop.eup %7915  ;;  %v1022_v50 = vsel %vm1017_vm0, %v7914_v30, 0 }
 0x184   : > { %v1019_v20 = vsel %vm1017_vm0, %v7916_v48, 0  ;;  %v1104_v38 = vand.u32 4294901760, %v1022_v50 }
 0x185   : > { %v1094_v42 = vand.u32 4294901760, %v1019_v20 }
 0x186   : > { %v1105_v47 = vsub.f32 %v1022_v50, %v1104_v38 }
 0x187   : > { %v1095_v60 = vsub.f32 %v1019_v20, %v1094_v42 }
 0x188   : > { %v1106_v13 = vand.u32 4294901760, %v1105_v47 }
 0x189   : > { %v1096_v46 = vand.u32 4294901760, %v1095_v60 }
 0x18a   : > { %v1107_v40 = vsub.f32 %v1105_v47, %v1106_v13 }
 0x18b   : > { %6497 = vmatprep.mubr.f32.mxu1 %v1096_v46  ;;  %v1097_v29 = vsub.f32 %v1095_v60, %v1096_v46 }
 0x18c   : > { %6498 = vmatmul.mubr.f32.vlgmr.msra.gmra.mrb[2].mxu1 %v1106_v13  ;;  %v1108_v14 = vand.u32 4294901760, %v1107_v40 }
 0x18d   : > { %6502 = vmatprep.mubr.f32.mxu1 %v1094_v42  ;;  %v1098_v21 = vand.u32 4294901760, %v1097_v29  ;;  %6501 = vmatpush3.msra.mxu1 %v1117_v2 }
 0x18e   : > { %6505 = vmatprep.subr.msk.mxu1 %vm1024_vm13, %v8329_v57 }
 0x18f   : > { %6482 = vmatprep.mubr.f32.mxu0 %v1098_v21 }
 0x190   : > { %6483 = vmatmul.mubr.f32.vlgmr.msra.gmra.mrb[2].mxu0 %v1108_v14 }
 0x191   : > { %6486 = vmatpush3.msra.mxu0 %v1119_v8  ;;  %6487 = vmatprep.mubr.f32.mxu0 %v1094_v42 }
 0x192   : > { %6490 = vmatprep.subr.mxu0 %v1116_v0 }
 0x194   : > { %6503 = vmatmul.mubr.f32.vlgmr.msra.gmra.mrb[2].mxu1 %v1104_v38 }
 0x195   : > { %6507 = vmatprep.mubr.f32.mxu1 %v1094_v42  ;;  %6506 = vmatpush3.msk.msra.mxu1 %vm1024_vm13, %v8329_v57 }
 0x198   : > { %6488 = vmatmul.mubr.f32.vlgmr.msra.gmra.mrb[2].mxu0 %v1104_v38 }
 0x199   : > { %6491 = vmatpush3.msra.mxu0 %v1116_v0  ;;  %6492 = vmatprep.mubr.f32.mxu0 %v1095_v60 }
 0x19c   : > { %6508 = vmatmul.mubr.f32.vlgmr.msra.gmra.mrb[2].mxu1 %v1104_v38 }
 0x1a0   : > { %6493 = vmatmul.mubr.f32.vlgmr.msra.gmra.mrb[2].mxu0 %v1105_v47 }
 0x26f   : > { %v6509_v35 = vpop.f32.mrb[2].mxu1 }
 0x270   : > { %v1507_v27 = vpop.f32.mrb[3].mxu1 }
 0x273   : > { %v6494_v52 = vpop.f32.mrb[2].mxu0 }
 0x274   : > { %v7766_v54 = vadd.f32 %v6509_v35, %v6494_v52  ;;  %v1266_v6 = vpop.f32.mrb[3].mxu0 }
 0x275   : > { %v7767_v34 = vadd.f32 %v1507_v27, %v1266_v6 }
 0x276   : > { %v1518_v18 = vmul.f32 %v7766_v54, %v8396_v3 }
 0x277   : > { %v1517_v49 = vmul.f32 %v7767_v34, %v8344_v59 }
 0x278   : > { %1520 = vst [vmem:[#allocation2 + $0x8] sm:$0xff] %v1518_v18  ;;  %1522 = vst [vmem:[#allocation4 + $0x8] sm:$0xff] %v1518_v18 }
 0x279   : > { %1519 = vst [vmem:[#allocation2] sm:$0xff] %v1517_v49  ;;  %1521 = vst [vmem:[#allocation4] sm:$0xff] %v1517_v49 }
 0x27a PF: > { %p5696_p9 = scmp.ne.s32.totalorder %s7987_s12, 0 }
 0x27b   : > { %v8007_v41 = vmov (!%p5696_p9), 0.0  }
 0x27c   : > { %1525 = sbr.rel (%p5696_p9) target bundleno = 643 (0x283), region = 40  ;;  %1526 = vst [vmem:[#allocation3] sm:$0xff] (!%p5696_p9), %v8007_v41  ;;  %1527 = vst [vmem:[#allocation3 + $0x8] sm:$0xff] (!%p5696_p9), %v8007_v41 }
 0x283 PF: > { %v1528_v55 = vld [vmem:[%s8078_s25] sm:$0xff]  ;;  %v8008_v56 = vmov 0   ;;  %v1557_v58 = vld [vmem:[#allocation2 + $0x8] sm:$0xff]  ;;  %vm1558_vm14 = vcmask 130048   ;;  %v9647_v10 = vmov 0.0   ;;  %vm8774_vm9 = vmpackc.low %vm8120_vm11, %vm8112_vm8  ;;  %p5764_p10 = scmp.ne.s32.totalorder %s7987_s12, 2 }
 0x284   : > { %v1542_v3 = vld [vmem:[%s8083_s28] sm:$0xff]  ;;  %7917 = vset.pattern.permute.xlu0 %v8008_v56  ;;  %7918 = vset.pattern.permute.xlu1 %v8008_v56  ;;  %v1569_v63 = vand.u32 4294901760, %v1557_v58  ;;  %v1529_v39 = vld [vmem:[%s8078_s25 + $0x8] sm:$0xff] }
 0x285   : > { %v1556_v59 = vld [vmem:[#allocation2] sm:$0xff]  ;;  %1531 = vperm.xlu0 %7917, %v1528_v55   ;;  %1545 = vperm.xlu1 %7918, %v1542_v3   ;;  %v1543_v45 = vld [vmem:[%s8083_s28 + $0x8] sm:$0xff] }
 0x286   : > { %v1566_v61 = vand.u32 4294901760, %v1556_v59  ;;  %v1661_v0 = vsub.f32 %v1557_v58, %v1569_v63  ;;  %v2067_v43 = vld [vmem:[#allocation4] sm:$0xff]  ;;  %v2068_v62 = vld [vmem:[#allocation4 + $0x8] sm:$0xff] }
 0x287   : > { %v2076_v22 = vand.u32 4294901760, %v2067_v43  ;;  %v2079_v32 = vand.u32 4294901760, %v2068_v62 }
 0x288   : > { %v1654_v36 = vsub.f32 %v1556_v59, %v1566_v61  ;;  %v8710_v5 = vpack.c.bf16 %v1569_v63, %v1566_v61  ;;  %v1662_v9 = vand.u32 4294901760, %v1661_v0 }
 0x289   : > { %1534 = vperm.xlu0 %7917, %v1529_v39   ;;  %1548 = vperm.xlu1 %7918, %v1543_v45   ;;  %v2164_v38 = vsub.f32 %v2067_v43, %v2076_v22  ;;  %v2171_v42 = vsub.f32 %v2068_v62, %v2079_v32  ;;  %v7332_v54 = vpack.c.bf16 %v2079_v32, %v2076_v22  ;;  %v9658_v43 = vld [vmem:[#allocation10_spill] sm:$0xff]  ;;  %v9660_v62 = vld [vmem:[#allocation11_spill] sm:$0xff] }
 0x28a   : > { %v7316_v2 = vpack.c.bf16 %v1661_v0, %v1654_v36  ;;  %7309 = vmatprep.subr.bf16.mxu1 %v8710_v5  ;;  %v1655_v8 = vand.u32 4294901760, %v1654_v36  ;;  %v1663_v12 = vsub.f32 %v1661_v0, %v1662_v9  ;;  %v8756_v0 = vsub.f32 %v8144_v23, %v8144_v23  ;;  %v9665_v22 = vld [vmem:[#allocation18_spill] sm:$0xff] }
 0x28b   : > { %7311 = vmatpush3.bf16.msra.mxu1 %v8710_v5  ;;  %v2172_v14 = vand.u32 4294901760, %v2171_v42  ;;  %v7340_v45 = vpack.c.bf16 %v2171_v42, %v2164_v38  ;;  %vm9659_vm8 = vnez %v9658_v43  ;;  %vm9661_vm11 = vnez %v9660_v62 }
 0x28c   : > { %7317 = vmatprep.subr.bf16.mxu0 %v7316_v2  ;;  %v1656_v11 = vsub.f32 %v1654_v36, %v1655_v8  ;;  %v1664_v17 = vand.u32 4294901760, %v1663_v12  ;;  %v7324_v26 = vpack.c.bf16 %v1662_v9, %v1655_v8  ;;  %v8768_v8 = vsub.f32 %v8170_v28, %v8170_v28 }
 0x28d   : > { %7319 = vmatpush3.bf16.msra.mxu0 %v7316_v2  ;;  %v2173_v49 = vsub.f32 %v2171_v42, %v2172_v14  ;;  %v8760_v2 = vsub.f32 %v8149_v24, %v8149_v24  ;;  %v9652_v24 = vld [vmem:[#allocation9_spill] sm:$0xff]  ;;  %v8009_v28 = vmov 1.0|1.0   ;;  %v8832_v32 = vsub.f32 %v9665_v22, %v9665_v22 }
 0x28e   : > { %7321 = vmatprep.subr.bf16.mxu0 %v8710_v5  ;;  %v1657_v16 = vand.u32 4294901760, %v1656_v11  ;;  %vm9653_vm2 = vnez %v9652_v24 }
 0x28f   : > { %v2174_v56 = vand.u32 4294901760, %v2173_v49  ;;  %vm8782_vm0 = vmpackc.low %vm9653_vm2, %vm8132_vm15 }
 0x290   : > { %v7312_v19 = vpack.c.bf16 %v1664_v17, %v1657_v16  ;;  %v9656_v16 = vld [vmem:[#allocation12_spill] sm:$0xff]  ;;  %vm8817_vm15 = vmpackc.low %vm9661_vm11, %vm9659_vm8 }
 0x291   : > { %v8799_v17 = vsub.f32 %v9656_v16, %v9656_v16  ;;  %vm8934_vm11 = vmpackc.low %vm8272_vm4, %vm8257_vm12 }
 0x292   : > { %7313 = vmatprep.subr.bf16.mxu1 %v7312_v19 }
 0x293   : > { %v2711_v22 = vand.u32 4294901760, %v8799_v17 }
 0x304   : > { %v1532_v4 = vpop.permute.xlu0 %1531  ;;  %v1546_v7 = vpop.permute.xlu1 %1545 }
 0x305   : > { %vm1536_vm6 = vcmp.eq.s32.totalorder %v1532_v4, %v8073_v1  ;;  %vm1550_vm13 = vcmp.eq.s32.totalorder %v1546_v7, %v8073_v1 }
 0x306   : > { %v5697_v31 = vsel %vm1536_vm6, 1.0, %v9647_v10  ;;  %v8721_v48 = vsel %vm1550_vm13, 1.0, %v9647_v10 }
 0x307   : > { %v1560_v33 = vsel %vm1558_vm14, %v5697_v31, 0  ;;  %v2070_v60 = vsel %vm1558_vm14, %v8721_v48, 0 }
 0x308   : > { %v1535_v37 = vpop.permute.xlu0 %1534  ;;  %v1633_v44 = vsub.f32 %v1560_v33, %v1560_v33  ;;  %v1549_v30 = vpop.permute.xlu1 %1548  ;;  %v2143_v35 = vsub.f32 %v2070_v60, %v2070_v60  ;;  %v9666_v33 = vld [vmem:[#allocation13_spill] sm:$0xff]  ;;  %v9676_v60 = vld [vmem:[#allocation19_spill] sm:$0xff] }
 0x309   : > { %vm1537_vm7 = vcmp.eq.s32.totalorder %v1535_v37, %v8073_v1  ;;  %vm1551_vm10 = vcmp.eq.s32.totalorder %v1549_v30, %v8073_v1  ;;  %v2165_v1 = vand.u32 4294901760, %v2164_v38  ;;  %vm9667_vm6 = vnez %v9666_v33  ;;  %v9668_v37 = vld [vmem:[#allocation15_spill] sm:$0xff] }
 0x30a   : > { %v5698_v50 = vsel %vm1537_vm7, 1.0, %v9647_v10  ;;  %6528 = vmatprep.mubr.f32.mxu0 %v1633_v44  ;;  %v1634_v20 = vand.u32 4294901760, %v1633_v44  ;;  %v8729_v13 = vsel %vm1551_vm10, 1.0, %v9647_v10  ;;  %v2144_v41 = vand.u32 4294901760, %v2143_v35  ;;  %v9664_v10 = vld [vmem:[#allocation16_spill] sm:$0xff] }
 0x30b   : > { %v1563_v47 = vsel %vm1558_vm14, %v5698_v50, 0  ;;  %v2073_v27 = vsel %vm1558_vm14, %v8729_v13, 0  ;;  %v2166_v18 = vsub.f32 %v2164_v38, %v2165_v1  ;;  %v7348_v36 = vpack.c.bf16 %v2172_v14, %v2165_v1  ;;  %v9673_v38 = vld [vmem:[#allocation22_spill] sm:$0xff] }
 0x30c   : > { %v1643_v46 = vsub.f32 %v1563_v47, %v1563_v47  ;;  %v1635_v40 = vsub.f32 %v1633_v44, %v1634_v20  ;;  %v2153_v6 = vsub.f32 %v2073_v27, %v2073_v27  ;;  %v2145_v59 = vsub.f32 %v2143_v35, %v2144_v41  ;;  %v9674_v47 = vld [vmem:[#allocation17_spill] sm:$0xff]  ;;  %v9681_v1 = vld [vmem:[#allocation26_spill] sm:$0xff] }
 0x30d   : > { %v2167_v3 = vand.u32 4294901760, %v2166_v18  ;;  %vm9669_vm13 = vnez %v9668_v37  ;;  %v8860_v42 = vsub.f32 %v9673_v38, %v9673_v38  ;;  %vm9675_vm10 = vnez %v9674_v47  ;;  %v9683_v18 = vld [vmem:[#allocation31_spill] sm:$0xff] }
 0x30e   : > { %6529 = vmatmul.mubr.f32.vlgmr.msra.gmra.mrb[0].mxu0 %v1643_v46  ;;  %v1636_v29 = vand.u32 4294901760, %v1635_v40  ;;  %v1644_v21 = vand.u32 4294901760, %v1643_v46  ;;  %v2154_v55 = vand.u32 4294901760, %v2153_v6  ;;  %v2146_v63 = vand.u32 4294901760, %v2145_v59  ;;  %vm8845_vm7 = vmpackc.low %vm9669_vm13, %vm9667_vm6 }
 0x30f   : > { %6535 = vmatprep.mubr.f32.mxu0 %v1634_v20  ;;  %7323 = vmatpush3.bf16.msra.mxu0 %v8710_v5  ;;  %v7336_v61 = vpack.c.bf16 %v2174_v56, %v2167_v3  ;;  %vm9677_vm2 = vnez %v9676_v60  ;;  %v8888_v14 = vsub.f32 %v9681_v1, %v9681_v1  ;;  %v8910_v27 = vsub.f32 %v8301_v51, %v8301_v51  ;;  %v9689_v56 = vld [vmem:[#allocation27_spill] sm:$0xff] }
 0x310   : > { %6514 = vmatprep.mubr.f32.mxu1 %v1636_v29  ;;  %v1645_v52 = vsub.f32 %v1643_v46, %v1644_v21  ;;  %7325 = vmatprep.subr.bf16.mxu0 %v7324_v26  ;;  %v2155_v58 = vsub.f32 %v2153_v6, %v2154_v55  ;;  %vm8873_vm8 = vmpackc.low %vm9677_vm2, %vm9675_vm10  ;;  %v9680_v29 = vld [vmem:[#allocation24_spill] sm:$0xff]  ;;  %v8927_v49 = vsub.f32 %v9683_v18, %v9683_v18 }
 0x311   : > { %vm9690_vm4 = vnez %v9689_v56 }
 0x312   : > { %v1646_v34 = vand.u32 4294901760, %v1645_v52  ;;  %v2156_v39 = vand.u32 4294901760, %v2155_v58  ;;  %v8914_v52 = vsub.f32 %v8312_v53, %v8312_v53  ;;  %vm8954_vm12 = vmpackc.low %vm9690_vm4, %vm8285_vm1  ;;  %v2683_v58 = vand.u32 4294901760, %v8756_v0 }
 0x313   : > { %vm8975_vm1 = vmpackc.low %vm8314_vm5, %vm8305_vm3  ;;  %vm3263_vm3 = vcmask 31744   ;;  %vm3292_vm5 = vcmask 1043456  }
 0x314   : > { %6515 = vmatmul.mubr.f32.vlgmr.msra.gmra.mrb[0].mxu1 %v1646_v34 }
 0x315   : > { %6521 = vmatprep.mubr.msk.f32.mxu1 %vm1558_vm14, %v5697_v31  ;;  %7315 = vmatpush3.bf16.msra.mxu1 %v7312_v19  ;;  %v9657_v19 = vld [vmem:[#allocation14_spill] sm:$0xff] }
 0x316   : > { %6536 = vmatmul.mubr.f32.vlgmr.msra.gmra.mrb[0].mxu0 %v1644_v21  ;;  %7333 = vmatprep.subr.bf16.mxu1 %v7332_v54  ;;  %v8884_v21 = vsub.f32 %v9680_v29, %v9680_v29 }
 0x317   : > { %6542 = vmatprep.mubr.msk.f32.mxu0 %vm1558_vm14, %v5697_v31  ;;  %7327 = vmatpush3.bf16.msra.mxu0 %v7324_v26  ;;  %v8803_v26 = vsub.f32 %v9657_v19, %v9657_v19 }
 0x318   : > { %7329 = vmatprep.subr.bf16.mxu0 %v8710_v5 }
 0x319   : > { %v8824_v7 = vpack.c.bf16 %v8803_v26, %v8799_v17  ;;  %v2718_v33 = vand.u32 4294901760, %v8803_v26 }
 0x31b   : > { %v2719_v38 = vsub.f32 %v8803_v26, %v2718_v33 }
 0x31c   : > { %6522 = vmatmul.mubr.msk.f32.vlgmr.msra.gmra.mrb[0].mxu1 %vm1558_vm14, %v5698_v50 }
 0x31d   : > { %7335 = vmatpush3.bf16.msra.mxu1 %v7332_v54  ;;  %6556 = vmatprep.mubr.f32.mxu1 %v2146_v63  ;;  %v2684_v63 = vsub.f32 %v8756_v0, %v2683_v58  ;;  %v2720_v60 = vand.u32 4294901760, %v2719_v38 }
 0x31e   : > { %6543 = vmatmul.mubr.msk.f32.vlgmr.msra.gmra.mrb[0].mxu0 %vm1558_vm14, %v5698_v50  ;;  %7337 = vmatprep.subr.bf16.mxu1 %v7336_v61 }
 0x31f   : > { %6549 = vmatprep.mubr.msk.f32.mxu0 %vm1558_vm14, %v5697_v31  ;;  %7331 = vmatpush3.bf16.msra.mxu0 %v8710_v5  ;;  %v8764_v5 = vsub.f32 %v8154_v25, %v8154_v25  ;;  %v8788_v25 = vpack.c.bf16 %v8760_v2, %v8756_v0  ;;  %v8828_v31 = vsub.f32 %v9664_v10, %v9664_v10  ;;  %v2685_v23 = vand.u32 4294901760, %v2684_v63 }
 0x320   : > { %6557 = vmatmul.mubr.f32.vlgmr.msra.gmra.mrb[2].mxu1 %v2156_v39  ;;  %v2704_v0 = vand.u32 4294901760, %v8768_v8 }
 0x321   : > { %6563 = vmatprep.mubr.msk.f32.mxu1 %vm1558_vm14, %v8721_v48  ;;  %7339 = vmatpush3.bf16.msra.mxu1 %v7336_v61  ;;  %v8792_v15 = vpack.c.bf16 %v8768_v8, %v8764_v5  ;;  %v8852_v30 = vpack.c.bf16 %v8832_v32, %v8828_v31  ;;  %v2690_v61 = vand.u32 4294901760, %v8760_v2  ;;  %v2697_v16 = vand.u32 4294901760, %v8764_v5 }
 0x322   : > { %7341 = vmatprep.subr.bf16.mxu1 %v7340_v45  ;;  %7421 = vmatprep.subr.bf16.mxu0 %v8788_v25  ;;  %v2705_v43 = vsub.f32 %v8768_v8, %v2704_v0  ;;  %v2732_v8 = vand.u32 4294901760, %v8832_v32 }
 0x323   : > { %v2691_v39 = vsub.f32 %v8760_v2, %v2690_v61  ;;  %v2698_v19 = vsub.f32 %v8764_v5, %v2697_v16  ;;  %v2725_v5 = vand.u32 4294901760, %v8828_v31 }
 0x324   : > { %v2706_v10 = vand.u32 4294901760, %v2705_v43  ;;  %v2767_v43 = vand.u32 4294901760, %v8910_v27 }
 0x325   : > { %v2692_v24 = vand.u32 4294901760, %v2691_v39  ;;  %v2699_v62 = vand.u32 4294901760, %v2698_v19  ;;  %v2726_v1 = vsub.f32 %v8828_v31, %v2725_v5  ;;  %v2760_v31 = vand.u32 4294901760, %v8888_v14 }
 0x326   : > { %6550 = vmatmul.mubr.msk.f32.vlgmr.msra.gmra.mrb[0].mxu0 %vm1558_vm14, %v5698_v50  ;;  %v9672_v50 = vld [vmem:[#allocation20_spill] sm:$0xff] }
 0x327   : > { %7423 = vmatpush3.bf16.msra.mxu0 %v8788_v25  ;;  %v8856_v20 = vsub.f32 %v9672_v50, %v9672_v50  ;;  %v8987_v2 = vpack.c.bf16 %v2692_v24, %v2685_v23  ;;  %v8994_v37 = vpack.c.bf16 %v2706_v10, %v2699_v62  ;;  %v2712_v50 = vsub.f32 %v8799_v17, %v2711_v22 }
 0x328   : > { %6564 = vmatmul.mubr.msk.f32.vlgmr.msra.gmra.mrb[2].mxu1 %vm1558_vm14, %v8729_v13  ;;  %7425 = vmatprep.subr.bf16.mxu0 %v8792_v15  ;;  %v2727_v18 = vand.u32 4294901760, %v2726_v1  ;;  %v2746_v17 = vand.u32 4294901760, %v8860_v42  ;;  %v2761_v23 = vsub.f32 %v8888_v14, %v2760_v31 }
 0x329   : > { %6570 = vmatprep.mubr.f32.mxu1 %v2143_v35  ;;  %7343 = vmatpush3.bf16.msra.mxu1 %v7340_v45  ;;  %v8880_v40 = vpack.c.bf16 %v8860_v42, %v8856_v20  ;;  %v8900_v35 = vpack.c.bf16 %v8888_v14, %v8884_v21  ;;  %v2713_v47 = vand.u32 4294901760, %v2712_v50  ;;  %v2739_v53 = vand.u32 4294901760, %v8856_v20 }
 0x32a   : > { %7345 = vmatprep.subr.bf16.mxu1 %v7332_v54  ;;  %v2747_v56 = vsub.f32 %v8860_v42, %v2746_v17  ;;  %v2753_v45 = vand.u32 4294901760, %v8884_v21  ;;  %v2762_v19 = vand.u32 4294901760, %v2761_v23  ;;  %v2768_v42 = vsub.f32 %v8910_v27, %v2767_v43 }
 0x32b   : > { %7427 = vmatpush3.bf16.msra.mxu0 %v8792_v15  ;;  %v9000_v29 = vpack.c.bf16 %v2720_v60, %v2713_v47  ;;  %v2740_v26 = vsub.f32 %v8856_v20, %v2739_v53  ;;  %v2774_v20 = vand.u32 4294901760, %v8914_v52 }
 0x32c   : > { %7429 = vmatprep.subr.bf16.mxu0 %v8824_v7  ;;  %v2748_v39 = vand.u32 4294901760, %v2747_v56  ;;  %v2769_v50 = vand.u32 4294901760, %v2768_v42  ;;  %v9036_v56 = vpack.c.bf16 %v2732_v8, %v2725_v5 }
 0x32d   : > { %v2741_v63 = vand.u32 4294901760, %v2740_v26  ;;  %v2775_v10 = vsub.f32 %v8914_v52, %v2774_v20 }
 0x32f   : > { %7431 = vmatpush3.bf16.msra.mxu0 %v8824_v7  ;;  %v2776_v38 = vand.u32 4294901760, %v2775_v10 }
 0x330   : > { %6571 = vmatmul.mubr.f32.vlgmr.msra.gmra.mrb[2].mxu1 %v2153_v6  ;;  %7433 = vmatprep.subr.bf16.mxu0 %v8852_v30  ;;  %v9682_v6 = vld [vmem:[#allocation30_spill] sm:$0xff] }
 0x331   : > { %6577 = vmatprep.mubr.f32.mxu1 %v2144_v41  ;;  %7347 = vmatpush3.bf16.msra.mxu1 %v7332_v54  ;;  %v8923_v34 = vsub.f32 %v9682_v6, %v9682_v6  ;;  %v2733_v6 = vsub.f32 %v8832_v32, %v2732_v8  ;;  %v2754_v32 = vsub.f32 %v8884_v21, %v2753_v45  ;;  %v2788_v21 = vand.u32 4294901760, %v8927_v49 }
 0x332   : > { %7349 = vmatprep.subr.bf16.mxu1 %v7348_v36  ;;  %v9024_v60 = vpack.c.bf16 %v2776_v38, %v2769_v50 }
 0x333   : > { %7435 = vmatpush3.bf16.msra.mxu0 %v8852_v30  ;;  %v2734_v51 = vand.u32 4294901760, %v2733_v6  ;;  %v2755_v24 = vand.u32 4294901760, %v2754_v32  ;;  %v2781_v47 = vand.u32 4294901760, %v8923_v34  ;;  %v2789_v1 = vsub.f32 %v8927_v49, %v2788_v21 }
 0x334   : > { %7437 = vmatprep.subr.bf16.mxu0 %v8880_v40  ;;  %v9028_v6 = vpack.c.bf16 %v2690_v61, %v2683_v58  ;;  %v9042_v32 = vpack.c.bf16 %v2774_v20, %v2767_v43 }
 0x335   : > { %v9006_v3 = vpack.c.bf16 %v2734_v51, %v2727_v18  ;;  %v9018_v62 = vpack.c.bf16 %v2762_v19, %v2755_v24  ;;  %v2782_v14 = vsub.f32 %v8923_v34, %v2781_v47  ;;  %v2790_v51 = vand.u32 4294901760, %v2789_v1 }
 0x337   : > { %7439 = vmatpush3.bf16.msra.mxu0 %v8880_v40  ;;  %v2783_v18 = vand.u32 4294901760, %v2782_v14 }
 0x338   : > { %6578 = vmatmul.mubr.f32.vlgmr.msra.gmra.mrb[2].mxu1 %v2154_v55  ;;  %7441 = vmatprep.subr.bf16.mxu0 %v8900_v35  ;;  %v8943_v55 = vpack.c.bf16 %v8927_v49, %v8923_v34  ;;  %v9044_v34 = vpack.c.bf16 %v2788_v21, %v2781_v47 }
 0x339   : > { %6584 = vmatprep.mubr.msk.f32.mxu1 %vm1558_vm14, %v8721_v48  ;;  %7351 = vmatpush3.bf16.msra.mxu1 %v7348_v36  ;;  %v9012_v36 = vpack.c.bf16 %v2748_v39, %v2741_v63  ;;  %v9030_v26 = vpack.c.bf16 %v2790_v51, %v2783_v18  ;;  %v9038_v63 = vpack.c.bf16 %v2746_v17, %v2739_v53 }
 0x33a   : > { %7353 = vmatprep.subr.bf16.mxu1 %v7332_v54  ;;  %v9040_v39 = vpack.c.bf16 %v2760_v31, %v2753_v45 }
 0x33b   : > { %7443 = vmatpush3.bf16.msra.mxu0 %v8900_v35 }
 0x340   : > { %6585 = vmatmul.mubr.msk.f32.vlgmr.msra.gmra.mrb[2].mxu1 %vm1558_vm14, %v8729_v13 }
 0x341   : > { %6591 = vmatprep.mubr.msk.f32.mxu1 %vm1558_vm14, %v8721_v48  ;;  %7355 = vmatpush3.bf16.msra.mxu1 %v7332_v54  ;;  %v8918_v54 = vpack.c.bf16 %v8914_v52, %v8910_v27  ;;  %v9032_v27 = vpack.c.bf16 %v2704_v0, %v2697_v16  ;;  %v9034_v52 = vpack.c.bf16 %v2718_v33, %v2711_v22 }
 0x342   : > { %7357 = vmatprep.subr.msk.bf16.mxu1 %vm8774_vm9, %v8009_v28 }
 0x343   : > { %7445 = vmatprep.subr.bf16.mxu0 %v8918_v54 }
 0x344   : > { %7447 = vmatpush3.bf16.msra.mxu0 %v8918_v54 }
 0x345   : > { %7449 = vmatprep.subr.bf16.mxu0 %v8943_v55 }
 0x348   : > { %6592 = vmatmul.mubr.msk.f32.vlgmr.msra.gmra.mrb[2].mxu1 %vm1558_vm14, %v8729_v13  ;;  %7451 = vmatpush3.bf16.msra.mxu0 %v8943_v55 }
 0x349   : > { %7359 = vmatpush3.bf16.msk.msra.mxu1 %vm8774_vm9, %v8009_v28  ;;  %7453 = vmatprep.subr.msk.bf16.mxu0 %vm8774_vm9, %v8009_v28 }
 0x34a   : > { %7361 = vmatprep.subr.msk.bf16.mxu1 %vm8782_vm0, %v8009_v28 }
 0x34d   : > { %7363 = vmatpush3.bf16.msk.msra.mxu1 %vm8782_vm0, %v8009_v28 }
 0x34e   : > { %7365 = vmatprep.subr.msk.bf16.mxu1 %vm8817_vm15, %v8009_v28 }
 0x351   : > { %7367 = vmatpush3.bf16.msk.msra.mxu1 %vm8817_vm15, %v8009_v28 }
 0x352   : > { %7369 = vmatprep.subr.msk.bf16.mxu1 %vm8845_vm7, %v8009_v28 }
 0x355   : > { %7371 = vmatpush3.bf16.msk.msra.mxu1 %vm8845_vm7, %v8009_v28 }
 0x356   : > { %7373 = vmatprep.subr.msk.bf16.mxu1 %vm8873_vm8, %v8009_v28 }
 0x359   : > { %7375 = vmatpush3.bf16.msk.msra.mxu1 %vm8873_vm8, %v8009_v28 }
 0x35a   : > { %7377 = vmatprep.subr.msk.bf16.mxu1 %vm8934_vm11, %v8009_v28 }
 0x35d   : > { %7379 = vmatpush3.bf16.msk.msra.mxu1 %vm8934_vm11, %v8009_v28 }
 0x35e   : > { %7381 = vmatprep.subr.msk.bf16.mxu1 %vm8954_vm12, %v8009_v28 }
 0x361   : > { %7383 = vmatpush3.bf16.msk.msra.mxu1 %vm8954_vm12, %v8009_v28 }
 0x362   : > { %7385 = vmatprep.subr.msk.bf16.mxu1 %vm8975_vm1, %v8009_v28 }
 0x365   : > { %7387 = vmatpush3.bf16.msk.msra.mxu1 %vm8975_vm1, %v8009_v28 }
 0x366   : > { %7389 = vmatprep.subr.bf16.mxu1 %v8987_v2 }
 0x3ef   : > { %v6523_v49 = vpop.f32.mrb[0].mxu1 }
 0x3f0   : > { %v1729_v58 = vpop.f32.mrb[1].mxu1 }
 0x3f9   : > { %v6551_v61 = vpop.f32.mrb[0].mxu0 }
 0x3fa   : > { %v9046_v23 = vadd.f32 %v6551_v61, %v6523_v49  ;;  %v2057_v24 = vpop.f32.mrb[1].mxu0 }
 0x3fb   : > { %v9048_v16 = vadd.f32 %v2057_v24, %v1729_v58 }
 0x41b   : > { %v6593_v0 = vpop.f32.mrb[2].mxu1 }
 0x41c   : > { %v2578_v22 = vmul.f32 %v9046_v23, %v6593_v0  ;;  %v2567_v33 = vpop.f32.mrb[3].mxu1 }
 0x41d   : > { %v2577_v5 = vmul.f32 %v9048_v16, %v2567_v33 }
 0x41e   : > { %v9052_v8 = vand.u32 4294901760, %v2578_v22 }
 0x41f   : > { %v9054_v53 = vand.u32 4294901760, %v2577_v5 }
 0x420   : > { %v2671_v17 = vsub.f32 %v2578_v22, %v9052_v8 }
 0x421   : > { %v2661_v45 = vsub.f32 %v2577_v5, %v9054_v53 }
 0x422   : > { %v2672_v31 = vand.u32 4294901760, %v2671_v17 }
 0x423   : > { %6696 = vmatprep.mubr.f32.mxu0 %v2661_v45  ;;  %v2662_v19 = vand.u32 4294901760, %v2661_v45 }
 0x424   : > { %v2673_v43 = vsub.f32 %v2671_v17, %v2672_v31  ;;  %6697 = vmatmul.mubr.f32.vlgmr.msra.gmra.mrb[2].mxu0 %v2671_v17 }
 0x425   : > { %7455 = vmatpush3.bf16.msk.msra.mxu0 %vm8774_vm9, %v8009_v28  ;;  %6731 = vmatprep.mubr.f32.mxu0 %v2662_v19  ;;  %v2663_v20 = vsub.f32 %v2661_v45, %v2662_v19 }
 0x426   : > { %7457 = vmatprep.subr.msk.bf16.mxu0 %vm8782_vm0, %v8009_v28  ;;  %v2674_v10 = vand.u32 4294901760, %v2673_v43 }
 0x427   : > { %v2664_v42 = vand.u32 4294901760, %v2663_v20 }
 0x429   : > { %7459 = vmatpush3.bf16.msk.msra.mxu0 %vm8782_vm0, %v8009_v28  ;;  %6626 = vmatprep.mubr.f32.mxu1 %v2664_v42 }
 0x42a   : > { %6627 = vmatmul.mubr.f32.vlgmr.msra.gmra.mrb[4].mxu1 %v2674_v10  ;;  %7461 = vmatprep.subr.msk.bf16.mxu0 %vm8817_vm15, %v8009_v28 }
 0x42b   : > { %7391 = vmatpush3.bf16.msra.mxu1 %v8987_v2  ;;  %6661 = vmatprep.mubr.f32.mxu1 %v9054_v53 }
 0x42c   : > { %7393 = vmatprep.subr.bf16.mxu1 %v8994_v37 }
 0x42d   : > { %7463 = vmatpush3.bf16.msk.msra.mxu0 %vm8817_vm15, %v8009_v28 }
 0x42e   : > { %7465 = vmatprep.subr.msk.bf16.mxu0 %vm8845_vm7, %v8009_v28 }
 0x42f   : > { %7395 = vmatpush3.bf16.msra.mxu1 %v8994_v37 }
 0x430   : > { %7397 = vmatprep.subr.bf16.mxu1 %v9000_v29 }
 0x431   : > { %7467 = vmatpush3.bf16.msk.msra.mxu0 %vm8845_vm7, %v8009_v28 }
 0x432   : > { %7469 = vmatprep.subr.msk.bf16.mxu0 %vm8873_vm8, %v8009_v28 }
 0x433   : > { %7399 = vmatpush3.bf16.msra.mxu1 %v9000_v29 }
 0x434   : > { %7401 = vmatprep.subr.bf16.mxu1 %v9006_v3 }
 0x435   : > { %7471 = vmatpush3.bf16.msk.msra.mxu0 %vm8873_vm8, %v8009_v28 }
 0x436   : > { %7473 = vmatprep.subr.msk.bf16.mxu0 %vm8934_vm11, %v8009_v28 }
 0x437   : > { %7403 = vmatpush3.bf16.msra.mxu1 %v9006_v3 }
 0x438   : > { %7405 = vmatprep.subr.bf16.mxu1 %v9012_v36 }
 0x439   : > { %7475 = vmatpush3.bf16.msk.msra.mxu0 %vm8934_vm11, %v8009_v28 }
 0x43a   : > { %7477 = vmatprep.subr.msk.bf16.mxu0 %vm8954_vm12, %v8009_v28 }
 0x43b   : > { %7407 = vmatpush3.bf16.msra.mxu1 %v9012_v36 }
 0x43c   : > { %7409 = vmatprep.subr.bf16.mxu1 %v9018_v62 }
 0x43d   : > { %7479 = vmatpush3.bf16.msk.msra.mxu0 %vm8954_vm12, %v8009_v28 }
 0x43e   : > { %7481 = vmatprep.subr.msk.bf16.mxu0 %vm8975_vm1, %v8009_v28 }
 0x43f   : > { %7411 = vmatpush3.bf16.msra.mxu1 %v9018_v62 }
 0x440   : > { %7413 = vmatprep.subr.bf16.mxu1 %v9024_v60 }
 0x441   : > { %7483 = vmatpush3.bf16.msk.msra.mxu0 %vm8975_vm1, %v8009_v28 }
 0x442   : > { %7485 = vmatprep.subr.bf16.mxu0 %v9028_v6 }
 0x443   : > { %7415 = vmatpush3.bf16.msra.mxu1 %v9024_v60 }
 0x444   : > { %6732 = vmatmul.mubr.f32.vlgmr.msra.gmra.mrb[2].mxu0 %v2672_v31  ;;  %7417 = vmatprep.subr.bf16.mxu1 %v9030_v26 }
 0x445   : > { %7487 = vmatpush3.bf16.msra.mxu0 %v9028_v6  ;;  %6766 = vmatprep.mubr.f32.mxu0 %v9054_v53 }
 0x446   : > { %7489 = vmatprep.subr.bf16.mxu0 %v9032_v27 }
 0x447   : > { %7419 = vmatpush3.bf16.msra.mxu1 %v9030_v26 }
 0x448   : > { %6804 = vmatprep.subr.msk.mxu1 %vm3292_vm5, %v8329_v57 }
 0x449   : > { %7491 = vmatpush3.bf16.msra.mxu0 %v9032_v27 }
 0x44a   : > { %6662 = vmatmul.mubr.f32.vlgmr.msra.gmra.mrb[4].mxu1 %v9052_v8  ;;  %7493 = vmatprep.subr.bf16.mxu0 %v9034_v52 }
 0x44b   : > { %6805 = vmatpush3.msk.msra.mxu1 %vm3292_vm5, %v8329_v57 }
 0x44d   : > { %7495 = vmatpush3.bf16.msra.mxu0 %v9034_v52 }
 0x44e   : > { %7497 = vmatprep.subr.bf16.mxu0 %v9036_v56 }
 0x451   : > { %7499 = vmatpush3.bf16.msra.mxu0 %v9036_v56 }
 0x452   : > { %7501 = vmatprep.subr.bf16.mxu0 %v9038_v63 }
 0x455   : > { %7503 = vmatpush3.bf16.msra.mxu0 %v9038_v63 }
 0x456   : > { %7505 = vmatprep.subr.bf16.mxu0 %v9040_v39 }
 0x459   : > { %7507 = vmatpush3.bf16.msra.mxu0 %v9040_v39 }
 0x45a   : > { %7509 = vmatprep.subr.bf16.mxu0 %v9042_v32 }
 0x45d   : > { %7511 = vmatpush3.bf16.msra.mxu0 %v9042_v32 }
 0x45e   : > { %7513 = vmatprep.subr.bf16.mxu0 %v9044_v34 }
 0x461   : > { %7515 = vmatpush3.bf16.msra.mxu0 %v9044_v34 }
 0x462   : > { %7517 = vmatprep.subr.msk.bf16.mxu0 %vm8774_vm9, %v8009_v28 }
 0x464   : > { %6767 = vmatmul.mubr.f32.vlgmr.msra.gmra.mrb[2].mxu0 %v9052_v8 }
 0x465   : > { %7519 = vmatpush3.bf16.msk.msra.mxu0 %vm8774_vm9, %v8009_v28  ;;  %6801 = vmatprep.mubr.f32.mxu0 %v9054_v53 }
 0x466   : > { %7521 = vmatprep.subr.msk.bf16.mxu0 %vm8782_vm0, %v8009_v28 }
 0x469   : > { %7523 = vmatpush3.bf16.msk.msra.mxu0 %vm8782_vm0, %v8009_v28 }
 0x46a   : > { %7525 = vmatprep.subr.msk.bf16.mxu0 %vm8817_vm15, %v8009_v28 }
 0x46d   : > { %7527 = vmatpush3.bf16.msk.msra.mxu0 %vm8817_vm15, %v8009_v28 }
 0x46e   : > { %7529 = vmatprep.subr.msk.bf16.mxu0 %vm8845_vm7, %v8009_v28 }
 0x471   : > { %7531 = vmatpush3.bf16.msk.msra.mxu0 %vm8845_vm7, %v8009_v28 }
 0x472   : > { %7533 = vmatprep.subr.msk.bf16.mxu0 %vm8873_vm8, %v8009_v28 }
 0x475   : > { %7535 = vmatpush3.bf16.msk.msra.mxu0 %vm8873_vm8, %v8009_v28 }
 0x476   : > { %7537 = vmatprep.subr.msk.bf16.mxu0 %vm8934_vm11, %v8009_v28 }
 0x479   : > { %7539 = vmatpush3.bf16.msk.msra.mxu0 %vm8934_vm11, %v8009_v28 }
 0x47a   : > { %7541 = vmatprep.subr.msk.bf16.mxu0 %vm8954_vm12, %v8009_v28 }
 0x47d   : > { %7543 = vmatpush3.bf16.msk.msra.mxu0 %vm8954_vm12, %v8009_v28 }
 0x47e   : > { %7545 = vmatprep.subr.msk.bf16.mxu0 %vm8975_vm1, %v8009_v28 }
 0x481   : > { %7547 = vmatpush3.bf16.msk.msra.mxu0 %vm8975_vm1, %v8009_v28 }
 0x484   : > { %6802 = vmatmul.mubr.f32.vlgmr.msra.gmra.mrb[2].mxu0 %v9052_v8 }
 0x51d   : > { %v6663_v50 = vpop.f32.mrb[4].mxu1 }
 0x51e   : > { %v2827_v38 = vpop.f32.mrb[5].mxu1 }
 0x557   : > { %v6803_v47 = vpop.f32.mrb[2].mxu0 }
 0x558   : > { %v7786_v21 = vadd.f32 %v6803_v47, %v6663_v50  ;;  %v3253_v14 = vpop.f32.mrb[3].mxu0 }
 0x559   : > { %v7787_v1 = vadd.f32 %v3253_v14, %v2827_v38 }
 0x55a   : > { %v3267_v18 = vsel %vm3263_vm3, %v7786_v21, -inf }
 0x55b   : > { %3268 = vmax.xlane.f32.xlu1 %v3267_v18  ;;  %v3264_v51 = vsel %vm3263_vm3, %v7787_v1, -inf }
 0x55c   : > { %3265 = vmax.xlane.f32.xlu0 %v3264_v51 }
 0x58e   : > { %3789 = vxpose.xlu1.b32.start [1/2] (short) (narrow) %v8721_v48, 16  ;;  %v3294_v48 = vsel %vm3292_vm5, %v8329_v57, 0 }
 0x592   : > { %3790 = vxpose.xlu1.b32.end [2/2] (short) (narrow) %v8729_v13, 16  ;;  %v9200_v13 = vsub.f32 %v3294_v48, %v3294_v48 }
 0x594   : > { %v9203_v53 = vand.u32 4294901760, %v9200_v13 }
 0x596   : > { %v3386_v17 = vsub.f32 %v9200_v13, %v9203_v53 }
 0x598   : > { %v9207_v45 = vand.u32 4294901760, %v3386_v17 }
 0x59a   : > { %6809 = vmatprep.subr.mxu1 %v9207_v45 }
 0x5e8   : > { %v3269_v28 = vpop.xlane.xlu1 %3268 }
 0x5e9   : > { %v3271_v49 = vsub.f32 %v7786_v21, %v3269_v28  ;;  %v3266_v58 = vpop.xlane.xlu0 %3265 }
 0x5ea   : > { %v3270_v61 = vsub.f32 %v7787_v1, %v3266_v58 }
 0x5eb   : > { %v3274_v24 = vmul.f32 1.442695, %v3271_v49 }
 0x5ec   : > { %v3272_v0 = vmul.f32 1.442695, %v3270_v61 }
 0x5ee   : > { %7919 = vpow2.f32 %v3272_v0 }
 0x5ef   : > { %7921 = vpow2.f32 %v3274_v24 }
 0x5f8   : > { %v7920_v22 = vpop.eup %7919 }
 0x5f9   : > { %v3276_v33 = vsel %vm3263_vm3, %v7920_v22, 0.0  ;;  %v7922_v5 = vpop.eup %7921 }
 0x5fa   : > { %3277 = vadd.xlane.f32.xlu0 %v3276_v33  ;;  %v3279_v8 = vsel %vm3263_vm3, %v7922_v5, 0.0 }
 0x5fe   : > { %3280 = vadd.xlane.f32.xlu0 %v3279_v8 }
 0x60e   : > { %v3805_v24 = vpop.trf.xlu1 }
 0x60f   : > { %v3822_v0 = vsel %vm1558_vm14, %v3805_v24, 0 }
 0x612   : > { %v3806_v17 = vpop.trf.xlu1 }
 0x687   : > { %v3278_v31 = vpop.xlane.xlu0 %3277 }
 0x688   : > { %7923 = vrcp.f32 %v3278_v31  ;;  %v3825_v31 = vsel %vm1558_vm14, %v3806_v17, 0  ;;  %v3788_v17 = vld [vmem:[#allocation3 + $0x8] sm:$0xff] }
 0x68b   : > { %v3281_v19 = vpop.xlane.xlu0 %3280 }
 0x68c   : > { %7925 = vrcp.f32 %v3281_v19  ;;  %v3904_v19 = vand.u32 4294901760, %v3825_v31 }
 0x692   : > { %v7924_v43 = vpop.eup %7923 }
 0x693   : > { %v3283_v20 = vmul.f32 %v7924_v43, %v7920_v22  ;;  %v3894_v22 = vand.u32 4294901760, %v3822_v0  ;;  %v3905_v43 = vsub.f32 %v3825_v31, %v3904_v19  ;;  %v3787_v31 = vld [vmem:[#allocation3] sm:$0xff] }
 0x695   : > { %v3287_v42 = vsel %vm3263_vm3, %v3283_v20, 0  ;;  %v3895_v33 = vsub.f32 %v3822_v0, %v3894_v22 }
 0x696   : > { %v7926_v10 = vpop.eup %7925  ;;  %v3362_v50 = vand.u32 4294901760, %v3287_v42 }
 0x697   : > { %v3285_v38 = vmul.f32 %v7926_v10, %v7922_v5  ;;  %v3896_v5 = vand.u32 4294901760, %v3895_v33 }
 0x698   : > { %v3363_v47 = vsub.f32 %v3287_v42, %v3362_v50 }
 0x699   : > { %v3290_v21 = vsel %vm3263_vm3, %v3285_v38, 0  ;;  %v3897_v8 = vsub.f32 %v3895_v33, %v3896_v5 }
 0x69a   : > { %v3372_v14 = vand.u32 4294901760, %v3290_v21  ;;  %v3364_v1 = vand.u32 4294901760, %v3363_v47 }
 0x69b   : > { %v3898_v48 = vand.u32 4294901760, %v3897_v8 }
 0x69c   : > { %v3365_v18 = vsub.f32 %v3363_v47, %v3364_v1  ;;  %v3373_v51 = vsub.f32 %v3290_v21, %v3372_v14 }
 0x69e   : > { %v3366_v28 = vand.u32 4294901760, %v3365_v18  ;;  %v3374_v49 = vand.u32 4294901760, %v3373_v51 }
 0x6a0   : > { %6806 = vmatprep.mubr.f32.mxu1 %v3366_v28  ;;  %v3375_v58 = vsub.f32 %v3373_v51, %v3374_v49 }
 0x6a2   : > { %v3376_v61 = vand.u32 4294901760, %v3375_v58 }
 0x6a4   : > { %6807 = vmatmul.mubr.f32.vlgmr.msra.gmra.mrb[6].mxu1 %v3376_v61 }
 0x6a5   : > { %6811 = vmatprep.mubr.f32.mxu1 %v3362_v50  ;;  %6810 = vmatpush3.msra.mxu1 %v9207_v45 }
 0x6a6   : > { %6814 = vmatprep.subr.mxu1 %v9200_v13 }
 0x6ac   : > { %6812 = vmatmul.mubr.f32.vlgmr.msra.gmra.mrb[6].mxu1 %v3372_v14 }
 0x6ad   : > { %6816 = vmatprep.mubr.f32.mxu1 %v3363_v47  ;;  %6815 = vmatpush3.msra.mxu1 %v9200_v13 }
 0x6ae   : > { %6819 = vmatprep.subr.msk.mxu1 %vm3292_vm5, %v8329_v57 }
 0x6b4   : > { %6817 = vmatmul.mubr.f32.vlgmr.msra.gmra.mrb[6].mxu1 %v3373_v51 }
 0x6b5   : > { %6821 = vmatprep.mubr.f32.mxu1 %v3364_v1  ;;  %6820 = vmatpush3.msk.msra.mxu1 %vm3292_vm5, %v8329_v57 }
 0x6b6   : > { %6824 = vmatprep.subr.mxu1 %v9203_v53 }
 0x6bc   : > { %6822 = vmatmul.mubr.f32.vlgmr.msra.gmra.mrb[6].mxu1 %v3374_v49 }
 0x6bd   : > { %6826 = vmatprep.mubr.f32.mxu1 %v3362_v50  ;;  %6825 = vmatpush3.msra.mxu1 %v9203_v53 }
 0x6be   : > { %6829 = vmatprep.subr.msk.mxu1 %vm3292_vm5, %v8329_v57 }
 0x6c4   : > { %6827 = vmatmul.mubr.f32.vlgmr.msra.gmra.mrb[6].mxu1 %v3372_v14 }
 0x6c5   : > { %6831 = vmatprep.mubr.f32.mxu1 %v3362_v50  ;;  %6830 = vmatpush3.msk.msra.mxu1 %vm3292_vm5, %v8329_v57  ;;  %v3906_v50 = vand.u32 4294901760, %v3905_v43 }
 0x6c7   : > { %v3907_v1 = vsub.f32 %v3905_v43, %v3906_v50 }
 0x6c9   : > { %v3908_v24 = vand.u32 4294901760, %v3907_v1 }
 0x6cc   : > { %6832 = vmatmul.mubr.f32.vlgmr.msra.gmra.mrb[6].mxu1 %v3372_v14 }
 0x6cd   : > { %6838 = vmatprep.mubr.f32.mxu1 %v3898_v48 }
 0x79f   : > { %v6833_v20 = vpop.f32.mrb[6].mxu1 }
 0x7a0   : > { %v3786_v42 = vmul.f32 %v9046_v23, %v6833_v20  ;;  %v3775_v10 = vpop.f32.mrb[7].mxu1 }
 0x7a1   : > { %v3785_v38 = vmul.f32 %v9048_v16, %v3775_v10 }
 0x7a2   : > { %v3831_v47 = vand.u32 4294901760, %v3786_v42 }
 0x7a3   : > { %v3828_v21 = vand.u32 4294901760, %v3785_v38 }
 0x7a4   : > { %v3923_v14 = vsub.f32 %v3786_v42, %v3831_v47 }
 0x7a5   : > { %v7548_v18 = vpack.c.bf16 %v3831_v47, %v3828_v21  ;;  %v3916_v51 = vsub.f32 %v3785_v38, %v3828_v21 }
 0x7a6   : > { %v3924_v28 = vand.u32 4294901760, %v3923_v14 }
 0x7a7   : > { %v3917_v49 = vand.u32 4294901760, %v3916_v51  ;;  %7549 = vmatprep.subr.bf16.mxu1 %v7548_v18  ;;  %v7556_v58 = vpack.c.bf16 %v3923_v14, %v3916_v51 }
 0x7a8   : > { %7551 = vmatpush3.bf16.msra.mxu1 %v7548_v18  ;;  %v3925_v61 = vsub.f32 %v3923_v14, %v3924_v28 }
 0x7a9   : > { %v3918_v0 = vsub.f32 %v3916_v51, %v3917_v49  ;;  %v7564_v8 = vpack.c.bf16 %v3924_v28, %v3917_v49 }
 0x7aa   : > { %v3926_v23 = vand.u32 4294901760, %v3925_v61 }
 0x7ab   : > { %6839 = vmatmul.mubr.f32.vlgmr.msra.gmra.mrb[8].mxu1 %v3908_v24  ;;  %v3919_v48 = vand.u32 4294901760, %v3918_v0 }
 0x7ac   : > { %6845 = vmatprep.mubr.f32.mxu1 %v3894_v22 }
 0x7ad   : > { %v7552_v16 = vpack.c.bf16 %v3926_v23, %v3919_v48 }
 0x7af   : > { %7553 = vmatprep.subr.bf16.mxu1 %v7552_v16 }
 0x7b0   : > { %7555 = vmatpush3.bf16.msra.mxu1 %v7552_v16 }
 0x7b1   : > { %7557 = vmatprep.subr.bf16.mxu1 %v7556_v58 }
 0x7b3   : > { %6846 = vmatmul.mubr.f32.vlgmr.msra.gmra.mrb[8].mxu1 %v3904_v19 }
 0x7b4   : > { %7559 = vmatpush3.bf16.msra.mxu1 %v7556_v58  ;;  %6852 = vmatprep.mubr.f32.mxu1 %v3895_v33 }
 0x7b5   : > { %7561 = vmatprep.subr.bf16.mxu1 %v7548_v18 }
 0x7bb   : > { %6853 = vmatmul.mubr.f32.vlgmr.msra.gmra.mrb[8].mxu1 %v3905_v43  ;;  %v8010_v43 = vmov (!%p5764_p10), 1.0|1.0  }
 0x7bc   : > { %7563 = vmatpush3.bf16.msra.mxu1 %v7548_v18  ;;  %6859 = vmatprep.mubr.f32.mxu1 %v3896_v5  ;;  %v4339_v5 = vld [vmem:[#allocation2] sm:$0xff] (!%p5764_p10) }
 0x7bd   : > { %7565 = vmatprep.subr.bf16.mxu1 %v7564_v8  ;;  %7669 = vmatprep.subr.msk.bf16.mxu0 (!%p5764_p10), %vm8774_vm9, %v8010_v43 }
 0x7be   : > { %7671 = vmatpush3.bf16.msk.msra.mxu0 (!%p5764_p10), %vm8774_vm9, %v8010_v43 }
 0x7bf   : > { %7673 = vmatprep.subr.msk.bf16.mxu0 (!%p5764_p10), %vm8782_vm0, %v8010_v43 }
 0x7c2   : > { %7675 = vmatpush3.bf16.msk.msra.mxu0 (!%p5764_p10), %vm8782_vm0, %v8010_v43 }
 0x7c3   : > { %6860 = vmatmul.mubr.f32.vlgmr.msra.gmra.mrb[8].mxu1 %v3906_v50  ;;  %v4340_v50 = vld [vmem:[#allocation2 + $0x8] sm:$0xff] (!%p5764_p10)  ;;  %7677 = vmatprep.subr.msk.bf16.mxu0 (!%p5764_p10), %vm8817_vm15, %v8010_v43 }
 0x7c4   : > { %7567 = vmatpush3.bf16.msra.mxu1 %v7564_v8  ;;  %6866 = vmatprep.mubr.f32.mxu1 %v3894_v22 }
 0x7c5   : > { %7569 = vmatprep.subr.bf16.mxu1 %v7548_v18 }
 0x7c6   : > { %7679 = vmatpush3.bf16.msk.msra.mxu0 (!%p5764_p10), %vm8817_vm15, %v8010_v43 }
 0x7c7   : > { %7681 = vmatprep.subr.msk.bf16.mxu0 (!%p5764_p10), %vm8845_vm7, %v8010_v43 }
 0x7ca   : > { %7683 = vmatpush3.bf16.msk.msra.mxu0 (!%p5764_p10), %vm8845_vm7, %v8010_v43 }
 0x7cb   : > { %6867 = vmatmul.mubr.f32.vlgmr.msra.gmra.mrb[8].mxu1 %v3904_v19  ;;  %7685 = vmatprep.subr.msk.bf16.mxu0 (!%p5764_p10), %vm8873_vm8, %v8010_v43 }
 0x7cc   : > { %7571 = vmatpush3.bf16.msra.mxu1 %v7548_v18  ;;  %6873 = vmatprep.mubr.f32.mxu1 %v3894_v22 }
 0x7cd   : > { %7573 = vmatprep.subr.msk.bf16.mxu1 (!%p5764_p10), %vm8774_vm9, %v8010_v43 }
 0x7ce   : > { %7687 = vmatpush3.bf16.msk.msra.mxu0 (!%p5764_p10), %vm8873_vm8, %v8010_v43 }
 0x7cf   : > { %7689 = vmatprep.subr.msk.bf16.mxu0 (!%p5764_p10), %vm8934_vm11, %v8010_v43 }
 0x7d2   : > { %7691 = vmatpush3.bf16.msk.msra.mxu0 (!%p5764_p10), %vm8934_vm11, %v8010_v43 }
 0x7d3   : > { %6874 = vmatmul.mubr.f32.vlgmr.msra.gmra.mrb[8].mxu1 %v3904_v19  ;;  %7693 = vmatprep.subr.msk.bf16.mxu0 (!%p5764_p10), %vm8954_vm12, %v8010_v43 }
 0x7d4   : > { %7575 = vmatpush3.bf16.msk.msra.mxu1 (!%p5764_p10), %vm8774_vm9, %v8010_v43 }
 0x7d5   : > { %7577 = vmatprep.subr.msk.bf16.mxu1 (!%p5764_p10), %vm8782_vm0, %v8010_v43 }
 0x7d6   : > { %7695 = vmatpush3.bf16.msk.msra.mxu0 (!%p5764_p10), %vm8954_vm12, %v8010_v43 }
 0x7d7   : > { %7697 = vmatprep.subr.msk.bf16.mxu0 (!%p5764_p10), %vm8975_vm1, %v8010_v43 }
 0x7d8   : > { %7579 = vmatpush3.bf16.msk.msra.mxu1 (!%p5764_p10), %vm8782_vm0, %v8010_v43 }
 0x7d9   : > { %7581 = vmatprep.subr.msk.bf16.mxu1 (!%p5764_p10), %vm8817_vm15, %v8010_v43 }
 0x7da   : > { %7699 = vmatpush3.bf16.msk.msra.mxu0 (!%p5764_p10), %vm8975_vm1, %v8010_v43 }
 0x7db   : > { %7701 = vmatprep.subr.bf16.mxu0 (!%p5764_p10), %v9028_v6 }
 0x7dc   : > { %7583 = vmatpush3.bf16.msk.msra.mxu1 (!%p5764_p10), %vm8817_vm15, %v8010_v43 }
 0x7dd   : > { %7585 = vmatprep.subr.msk.bf16.mxu1 (!%p5764_p10), %vm8845_vm7, %v8010_v43 }
 0x7e0   : > { %7587 = vmatpush3.bf16.msk.msra.mxu1 (!%p5764_p10), %vm8845_vm7, %v8010_v43 }
 0x7e1   : > { %7589 = vmatprep.subr.msk.bf16.mxu1 (!%p5764_p10), %vm8873_vm8, %v8010_v43 }
 0x7e4   : > { %7591 = vmatpush3.bf16.msk.msra.mxu1 (!%p5764_p10), %vm8873_vm8, %v8010_v43 }
 0x7e5   : > { %7593 = vmatprep.subr.msk.bf16.mxu1 (!%p5764_p10), %vm8934_vm11, %v8010_v43 }
 0x7e8   : > { %7595 = vmatpush3.bf16.msk.msra.mxu1 (!%p5764_p10), %vm8934_vm11, %v8010_v43 }
 0x7e9   : > { %7597 = vmatprep.subr.msk.bf16.mxu1 (!%p5764_p10), %vm8954_vm12, %v8010_v43 }
 0x7ec   : > { %7599 = vmatpush3.bf16.msk.msra.mxu1 (!%p5764_p10), %vm8954_vm12, %v8010_v43 }
 0x7ed   : > { %7601 = vmatprep.subr.msk.bf16.mxu1 (!%p5764_p10), %vm8975_vm1, %v8010_v43 }
 0x7f0   : > { %7603 = vmatpush3.bf16.msk.msra.mxu1 (!%p5764_p10), %vm8975_vm1, %v8010_v43 }
 0x7f1   : > { %7605 = vmatprep.subr.bf16.mxu1 (!%p5764_p10), %v8987_v2 }
 0x8a4   : > { %4336 = sbr.rel (%p5764_p10) target bundleno = 2794 (0xaea), region = 44 }
 0x8a6   : > { %v6875_v20 = vpop.f32.mrb[8].mxu1 }
 0x8a7   : > { %v4330_v42 = vadd.f32 %v6875_v20, %v3788_v17  ;;  %v4319_v10 = vpop.f32.mrb[9].mxu1 }
 0x8a8   : > { %v4329_v38 = vadd.f32 %v4319_v10, %v3787_v31 }
 0x8a9   : > { %4332 = vst [vmem:[#allocation3 + $0x8] sm:$0xff] %v4330_v42 }
 0x8aa   : > { %4331 = vst [vmem:[#allocation3] sm:$0xff] %v4329_v38 }
 0x8b0   : > { %v4338_v19 = vld [vmem:[#allocation3 + $0x8] sm:$0xff] }
 0x8b1   : > { %v4337_v33 = vld [vmem:[#allocation3] sm:$0xff]  ;;  %v9254_v14 = vadd.f32 %v4340_v50, %v4338_v19 }
 0x8b2   : > { %v9236_v22 = vadd.f32 %v4339_v5, %v4337_v33 }
 0x8b3   : > { %v4344_v51 = vmul.f32 %v9254_v14, %v9254_v14 }
 0x8b4   : > { %v4343_v47 = vmul.f32 %v9236_v22, %v9236_v22 }
 0x8b5   : > { %v9287_v58 = vand.u32 4294901760, %v4344_v51 }
 0x8b6   : > { %v9252_v21 = vand.u32 4294901760, %v4343_v47 }
 0x8b7   : > { %v9302_v61 = vsub.f32 %v4344_v51, %v9287_v58 }
 0x8b8   : > { %v9269_v1 = vsub.f32 %v4343_v47, %v9252_v21 }
 0x8b9   : > { %v4438_v24 = vand.u32 4294901760, %v9302_v61 }
 0x8ba   : > { %v4428_v18 = vand.u32 4294901760, %v9269_v1 }
 0x8bb   : > { %v4439_v0 = vsub.f32 %v9302_v61, %v4438_v24 }
 0x8bc   : > { %v4429_v28 = vsub.f32 %v9269_v1, %v4428_v18  ;;  %7013 = vmatprep.mubr.f32.mxu0 %v4428_v18 }
 0x8bd   : > { %v4440_v8 = vand.u32 4294901760, %v4439_v0  ;;  %7014 = vmatmul.mubr.f32.vlgmr.msra.gmra.mrb[0].mxu0 %v4438_v24 }
 0x8be   : > { %v4430_v49 = vand.u32 4294901760, %v4429_v28  ;;  %7703 = vmatpush3.bf16.msra.mxu0 %v9028_v6  ;;  %7048 = vmatprep.mubr.f32.mxu0 %v9252_v21 }
 0x8bf   : > { %7705 = vmatprep.subr.bf16.mxu0 %v9032_v27 }
 0x8c0   : > { %6908 = vmatprep.mubr.f32.mxu1 %v4430_v49 }
 0x8c1   : > { %6909 = vmatmul.mubr.f32.vlgmr.msra.gmra.mrb[0].mxu1 %v4440_v8 }
 0x8c2   : > { %7607 = vmatpush3.bf16.msra.mxu1 %v8987_v2  ;;  %6943 = vmatprep.mubr.f32.mxu1 %v9252_v21 }
 0x8c3   : > { %7609 = vmatprep.subr.bf16.mxu1 %v8994_v37  ;;  %7707 = vmatpush3.bf16.msra.mxu0 %v9032_v27 }
 0x8c4   : > { %7709 = vmatprep.subr.bf16.mxu0 %v9034_v52 }
 0x8c6   : > { %7611 = vmatpush3.bf16.msra.mxu1 %v8994_v37 }
 0x8c7   : > { %7613 = vmatprep.subr.bf16.mxu1 %v9000_v29  ;;  %7711 = vmatpush3.bf16.msra.mxu0 %v9034_v52 }
 0x8c8   : > { %7713 = vmatprep.subr.bf16.mxu0 %v9036_v56 }
 0x8ca   : > { %7615 = vmatpush3.bf16.msra.mxu1 %v9000_v29 }
 0x8cb   : > { %7617 = vmatprep.subr.bf16.mxu1 %v9006_v3  ;;  %7715 = vmatpush3.bf16.msra.mxu0 %v9036_v56 }
 0x8cc   : > { %7717 = vmatprep.subr.bf16.mxu0 %v9038_v63 }
 0x8ce   : > { %7619 = vmatpush3.bf16.msra.mxu1 %v9006_v3 }
 0x8cf   : > { %7621 = vmatprep.subr.bf16.mxu1 %v9012_v36  ;;  %7719 = vmatpush3.bf16.msra.mxu0 %v9038_v63 }
 0x8d0   : > { %7721 = vmatprep.subr.bf16.mxu0 %v9040_v39 }
 0x8d2   : > { %7623 = vmatpush3.bf16.msra.mxu1 %v9012_v36 }
 0x8d3   : > { %7625 = vmatprep.subr.bf16.mxu1 %v9018_v62  ;;  %7723 = vmatpush3.bf16.msra.mxu0 %v9040_v39 }
 0x8d4   : > { %7725 = vmatprep.subr.bf16.mxu0 %v9042_v32 }
 0x8d6   : > { %7627 = vmatpush3.bf16.msra.mxu1 %v9018_v62 }
 0x8d7   : > { %7629 = vmatprep.subr.bf16.mxu1 %v9024_v60  ;;  %7727 = vmatpush3.bf16.msra.mxu0 %v9042_v32 }
 0x8d8   : > { %7729 = vmatprep.subr.bf16.mxu0 %v9044_v34 }
 0x8da   : > { %7631 = vmatpush3.bf16.msra.mxu1 %v9024_v60 }
 0x8db   : > { %7633 = vmatprep.subr.bf16.mxu1 %v9030_v26  ;;  %7731 = vmatpush3.bf16.msra.mxu0 %v9044_v34 }
 0x8dc   : > { %7733 = vmatprep.subr.msk.bf16.mxu0 %vm8774_vm9, %v8010_v43 }
 0x8de   : > { %7635 = vmatpush3.bf16.msra.mxu1 %v9030_v26  ;;  %7049 = vmatmul.mubr.f32.vlgmr.msra.gmra.mrb[0].mxu0 %v9287_v58 }
 0x8df   : > { %7637 = vmatprep.subr.bf16.mxu1 %v8788_v25  ;;  %7735 = vmatpush3.bf16.msk.msra.mxu0 %vm8774_vm9, %v8010_v43 }
 0x8e0   : > { %7737 = vmatprep.subr.msk.bf16.mxu0 %vm8782_vm0, %v8010_v43  ;;  %7083 = vmatprep.mubr.f32.mxu0 %v9252_v21 }
 0x8e1   : > { %6944 = vmatmul.mubr.f32.vlgmr.msra.gmra.mrb[0].mxu1 %v9287_v58 }
 0x8e2   : > { %7639 = vmatpush3.bf16.msra.mxu1 %v8788_v25  ;;  %6978 = vmatprep.mubr.f32.mxu1 %v9269_v1 }
 0x8e3   : > { %7641 = vmatprep.subr.bf16.mxu1 %v8792_v15  ;;  %7739 = vmatpush3.bf16.msk.msra.mxu0 %vm8782_vm0, %v8010_v43 }
 0x8e4   : > { %7741 = vmatprep.subr.msk.bf16.mxu0 %vm8817_vm15, %v8010_v43 }
 0x8e6   : > { %7643 = vmatpush3.bf16.msra.mxu1 %v8792_v15 }
 0x8e7   : > { %7645 = vmatprep.subr.bf16.mxu1 %v8824_v7  ;;  %7743 = vmatpush3.bf16.msk.msra.mxu0 %vm8817_vm15, %v8010_v43 }
 0x8e8   : > { %7745 = vmatprep.subr.msk.bf16.mxu0 %vm8845_vm7, %v8010_v43 }
 0x8ea   : > { %7647 = vmatpush3.bf16.msra.mxu1 %v8824_v7 }
 0x8eb   : > { %7649 = vmatprep.subr.bf16.mxu1 %v8852_v30  ;;  %7747 = vmatpush3.bf16.msk.msra.mxu0 %vm8845_vm7, %v8010_v43 }
 0x8ec   : > { %7749 = vmatprep.subr.msk.bf16.mxu0 %vm8873_vm8, %v8010_v43 }
 0x8ee   : > { %7651 = vmatpush3.bf16.msra.mxu1 %v8852_v30 }
 0x8ef   : > { %7653 = vmatprep.subr.bf16.mxu1 %v8880_v40  ;;  %7751 = vmatpush3.bf16.msk.msra.mxu0 %vm8873_vm8, %v8010_v43 }
 0x8f0   : > { %7753 = vmatprep.subr.msk.bf16.mxu0 %vm8934_vm11, %v8010_v43 }
 0x8f2   : > { %7655 = vmatpush3.bf16.msra.mxu1 %v8880_v40 }
 0x8f3   : > { %7657 = vmatprep.subr.bf16.mxu1 %v8900_v35  ;;  %7755 = vmatpush3.bf16.msk.msra.mxu0 %vm8934_vm11, %v8010_v43 }
 0x8f4   : > { %7757 = vmatprep.subr.msk.bf16.mxu0 %vm8954_vm12, %v8010_v43 }
 0x8f6   : > { %7659 = vmatpush3.bf16.msra.mxu1 %v8900_v35 }
 0x8f7   : > { %7661 = vmatprep.subr.bf16.mxu1 %v8918_v54  ;;  %7759 = vmatpush3.bf16.msk.msra.mxu0 %vm8954_vm12, %v8010_v43 }
 0x8f8   : > { %7761 = vmatprep.subr.msk.bf16.mxu0 %vm8975_vm1, %v8010_v43 }
 0x8fa   : > { %7663 = vmatpush3.bf16.msra.mxu1 %v8918_v54 }
 0x8fb   : > { %7665 = vmatprep.subr.bf16.mxu1 %v8943_v55  ;;  %7763 = vmatpush3.bf16.msk.msra.mxu0 %vm8975_vm1, %v8010_v43 }
 0x8fc   : > { %7086 = vmatprep.subr.msk.mxu0 %vm3292_vm5, %v8329_v57 }
 0x8fe   : > { %7667 = vmatpush3.bf16.msra.mxu1 %v8943_v55  ;;  %7084 = vmatmul.mubr.f32.vlgmr.msra.gmra.mrb[0].mxu0 %v9287_v58 }
 0x8ff   : > { %7101 = vmatprep.subr.msk.mxu1 %vm3292_vm5, %v8329_v57  ;;  %7087 = vmatpush3.msk.msra.mxu0 %vm3292_vm5, %v8329_v57 }
 0x900   : > { %7091 = vmatprep.subr.mxu0 %v9207_v45 }
 0x901   : > { %6979 = vmatmul.mubr.f32.vlgmr.msra.gmra.mrb[0].mxu1 %v9302_v61 }
 0x902   : > { %7102 = vmatpush3.msk.msra.mxu1 %vm3292_vm5, %v8329_v57 }
 0x903   : > { %7106 = vmatprep.subr.mxu1 %v9203_v53 }
 0x9d1   : > { %v7085_v12 = vpop.f32.mrb[0].mxu0 }
 0x9d2   : > { %v5019_v4 = vpop.f32.mrb[1].mxu0 }
 0x9d4   : > { %v6980_v11 = vpop.f32.mrb[0].mxu1 }
 0x9d5   : > { %v7834_v25 = vadd.f32 %v7085_v12, %v6980_v11  ;;  %v4703_v15 = vpop.f32.mrb[1].mxu1 }
 0x9d6   : > { %v7835_v7 = vadd.f32 %v5019_v4, %v4703_v15 }
 0x9d7   : > { %7927 = vrsqrt.f32 %v7834_v25  ;;  %vm5038_vm14 = vcmp.eq.f32.partialorder %v7834_v25, inf  ;;  %v5041_v40 = vand.u32 2147483648, %v7834_v25  ;;  %vm5040_vm9 = vcmp.eq.f32.partialorder %v7834_v25, 0.0 }
 0x9d8   : > { %7929 = vrsqrt.f32 %v7835_v7  ;;  %vm5031_vm0 = vcmp.eq.f32.partialorder %v7835_v7, inf  ;;  %v5034_v41 = vand.u32 2147483648, %v7835_v7  ;;  %vm5033_vm15 = vcmp.eq.f32.partialorder %v7835_v7, 0.0 }
 0x9e1   : > { %v7928_v44 = vpop.eup %7927 }
 0x9e2   : > { %v7930_v30 = vpop.eup %7929  ;;  %v5037_v46 = vmul.f32 %v7928_v44, %v7834_v25 }
 0x9e3   : > { %v5030_v35 = vmul.f32 %v7930_v30, %v7835_v7 }
 0x9e4   : > { %v5039_v54 = vsel %vm5038_vm14, %v7834_v25, %v5037_v46 }
 0x9e5   : > { %v5032_v55 = vsel %vm5031_vm0, %v7835_v7, %v5030_v35  ;;  %v5042_v59 = vsel %vm5040_vm9, %v5041_v40, %v5039_v54 }
 0x9e6   : > { %v5035_v9 = vsel %vm5033_vm15, %v5034_v41, %v5032_v55  ;;  %v5044_v2 = vmax.f32 %v5042_v59, 1e-12 }
 0x9e7   : > { %v5043_v37 = vmax.f32 %v5035_v9, 1e-12 }
 0x9e8   : > { %7931 = vrcp.f32 %v5044_v2 }
 0x9e9   : > { %7933 = vrcp.f32 %v5043_v37 }
 0x9f2   : > { %v7932_v29 = vpop.eup %7931 }
 0x9f3   : > { %v7934_v3 = vpop.eup %7933  ;;  %v5053_v36 = vsel %vm3263_vm3, %v7932_v29, 0 }
 0x9f4   : > { %v5050_v62 = vsel %vm3263_vm3, %v7934_v3, 0  ;;  %v5131_v60 = vand.u32 4294901760, %v5053_v36 }
 0x9f5   : > { %v5121_v6 = vand.u32 4294901760, %v5050_v62 }
 0x9f6   : > { %v5132_v26 = vsub.f32 %v5053_v36, %v5131_v60 }
 0x9f7   : > { %v5122_v27 = vsub.f32 %v5050_v62, %v5121_v6 }
 0x9f8   : > { %v5133_v52 = vand.u32 4294901760, %v5132_v26 }
 0x9f9   : > { %v5123_v56 = vand.u32 4294901760, %v5122_v27 }
 0x9fa   : > { %v5134_v63 = vsub.f32 %v5132_v26, %v5133_v52 }
 0x9fb   : > { %7103 = vmatprep.mubr.f32.mxu1 %v5123_v56  ;;  %v5124_v39 = vsub.f32 %v5122_v27, %v5123_v56 }
 0x9fc   : > { %7104 = vmatmul.mubr.f32.vlgmr.msra.gmra.mrb[2].mxu1 %v5133_v52  ;;  %v5135_v34 = vand.u32 4294901760, %v5134_v63 }
 0x9fd   : > { %7108 = vmatprep.mubr.f32.mxu1 %v5121_v6  ;;  %v5125_v32 = vand.u32 4294901760, %v5124_v39  ;;  %7107 = vmatpush3.msra.mxu1 %v9203_v53 }
 0x9fe   : > { %7111 = vmatprep.subr.msk.mxu1 %vm3292_vm5, %v8329_v57 }
 0x9ff   : > { %7088 = vmatprep.mubr.f32.mxu0 %v5125_v32 }
 0xa00   : > { %7089 = vmatmul.mubr.f32.vlgmr.msra.gmra.mrb[2].mxu0 %v5135_v34 }
 0xa01   : > { %7092 = vmatpush3.msra.mxu0 %v9207_v45  ;;  %7093 = vmatprep.mubr.f32.mxu0 %v5121_v6 }
 0xa02   : > { %7096 = vmatprep.subr.mxu0 %v9200_v13 }
 0xa04   : > { %7109 = vmatmul.mubr.f32.vlgmr.msra.gmra.mrb[2].mxu1 %v5131_v60 }
 0xa05   : > { %7113 = vmatprep.mubr.f32.mxu1 %v5121_v6  ;;  %7112 = vmatpush3.msk.msra.mxu1 %vm3292_vm5, %v8329_v57 }
 0xa08   : > { %7094 = vmatmul.mubr.f32.vlgmr.msra.gmra.mrb[2].mxu0 %v5131_v60 }
 0xa09   : > { %7097 = vmatpush3.msra.mxu0 %v9200_v13  ;;  %7098 = vmatprep.mubr.f32.mxu0 %v5122_v27 }
 0xa0c   : > { %7114 = vmatmul.mubr.f32.vlgmr.msra.gmra.mrb[2].mxu1 %v5131_v60 }
 0xa10   : > { %7099 = vmatmul.mubr.f32.vlgmr.msra.gmra.mrb[2].mxu0 %v5132_v26 }
 0xadf   : > { %v7115_v53 = vpop.f32.mrb[2].mxu1 }
 0xae0   : > { %v5534_v23 = vpop.f32.mrb[3].mxu1 }
 0xae3   : > { %v7100_v48 = vpop.f32.mrb[2].mxu0 }
 0xae4   : > { %v7836_v16 = vadd.f32 %v7115_v53, %v7100_v48  ;;  %v5293_v17 = vpop.f32.mrb[3].mxu0 }
 0xae5   : > { %v7837_v45 = vadd.f32 %v5534_v23, %v5293_v17 }
 0xae6   : > { %v5545_v31 = vmul.f32 %v7836_v16, %v9254_v14 }
 0xae7   : > { %v5544_v20 = vmul.f32 %v7837_v45, %v9236_v22 }
 0xae8   : > { %5547 = vst [vmem:[#allocation4 + $0x8] sm:$0xff] %v5545_v31 }
 0xae9   : > { %5546 = vst [vmem:[#allocation4] sm:$0xff] %v5544_v20 }
 0xaea PF: > { %p9476_p11 = scmp.eq.s32.totalorder %s5620_s17, 8  ;;  %s8011_s7 = smov [#allocation4]  }
 0xaeb   : > { %s5554_s8 = sshll.u32 %s8011_s7, 4  ;;  %s5555_s8 = int_to_ptr.vmem [resolvable:$true] %s5554_s8 }
 0xaec   : > { %s7935_s9 = scalar_lea.vmem %s5555_s8, 256  ;;  %p7942_p1 = scmp.lt.s32.totalorder %s5555_s8, %s5555_s8 }
 0xaed   : > { %p7936_p12 = scmp.ne.s32.totalorder %s5555_s8, %s7935_s9  ;;  %p7943_p2 = scmp.lt.s32.totalorder %s7935_s9, %s7935_s9 }
 0xaef   : > { %p7937_p13 = pnand %p7936_p12, %p9476_p11  ;;  %p7944_p3 = por %p7943_p2, %p7942_p1 }
 0xaf1   : > { %p7938_p0 = pneg %p7937_p13 }
 0xaf3   : > { %p7945_p4 = pnand %p7944_p3, %p7938_p0 }
 0xaf5   : > { %7948 = shalt.err (!%p7945_p4)
}
 0xaf6   : > { %s7949_s12 = scalar_lea.hbm %s9520_s3, 256 }
 0xaf7   : > { %p7950_p5 = scmp.ne.s32.totalorder %s9520_s3, %s7949_s12  ;;  %p7955_p8 = scmp.lt.u32.totalorder %s7949_s12, %s9520_s3 }
 0xaf9   : > { %p7951_p6 = pnand %p7950_p5, %p9476_p11 }
 0xafb   : > { %p7952_p7 = pneg %p7951_p6 }
 0xafd   : > { %p7957_p9 = pnand %p7955_p8, %p7952_p7 }
 0xaff   : > { %7960 = shalt.err (!%p7957_p9)
}
 0xb00   : > { %s8012_s22 = smov 128   ;;  %s8013_s23 = smov 8  }
 0xb01   : > { %7855 = dma.vmem_to_hbm [thread:$0]  (%p9476_p11), %s5555_s8, 256, %s9520_s3, [#allocation5], %s8012_s22, %s8012_s22, %s8013_s23  }
 0xb02   : > { %7982 = dma.done.wait (%p9476_p11), [#allocation5], 256  }
 0xb03   : > { %7984 = vsyncadd (%p9476_p11), [#allocation5], 4294967040 }
 0xb04 PF: > { %s14_s16 = sadd.s32 1, %s8003_s16   ;;  %s9698_s12 = smov %s7995_s14 }
 0xb05   : > { %p11_p10 = scmp.ge.s32.totalorder %s14_s16, 11   ;;  %s9699_s13 = smov %s7999_s15 }
 0xb06   : > { %s9700_s14 = smov %s9703_s18  ;;  %s9701_s15 = smov %s9707_s19 }
 0xb07   :  { %13 = sbr.rel (!%p11_p10) target bundleno = 3 (0x3), region = 74 }
 0xb0e   :  { %5570 = vsyncpa [#allocation5], 1 }
 0xb0f   :  { %5572 = vsyncpa [#allocation5 + $0x1], 1 }

</bundles_post_ra>
